<compile_context>
chip_gen: v7x
topology: tpu7x:2x2x1
jax: 0.10.0
libtpu: 0.0.40
codegen_flags: <defaults>
</compile_context>

<pallas_src>
import functools

import jax
import jax.numpy as jnp
from jax.experimental import pallas as pl
from jax.experimental.pallas import tpu as pltpu


# ----------------------------- fused kernel ---------------------------------

def _fused_forward_kernel(
        clr_ref, dep_ref, mask_ref,
        c_cw_ref, c_cb_ref, c_fw_ref, c_fb_ref,
        d_cw_ref, d_cb_ref, d_fw_ref, d_fb_ref,
        w1d_ref, w1c_ref, b1_ref, w2_ref, b2_ref,
        o_ref, *, img_w):
    """One batch element per grid step: both backbones + maxpool + regressor.

    Everything is kept in the transposed orientation (channels on sublanes,
    pixels on the 128-lane axis) so the large tensors are lane-dense; features
    are (dim, 1) columns, so no relayout is needed anywhere in the kernel.
    """
    hw = clr_ref.shape[-1]

    def stem_gap_fc(x, conv_wt, conv_b, fc_wt, fc_b, mask=None):
        # 1x1-conv stem: the K=3 contraction is 3 broadcast FMAs on the VPU
        # (review item: don't waste an almost-empty MXU pass on K=3).
        h = conv_b                                         # (C_MID, 1)
        for k in range(x.shape[0]):                        # C_IN, unrolled
            h = h + conv_wt[:, k:k + 1] * x[k:k + 1, :]    # -> (C_MID, HW)
        h = jnp.maximum(h, 0.0)
        if mask is not None:
            h = h * mask                                   # drop invalid pixels
        # Real global-average-pool: a cross-lane reduce on the XLU.  The 1/npix
        # scale is folded into fc_wt on the host.
        pooled = jnp.sum(h, axis=-1, keepdims=True)        # (C_MID, 1)
        return jnp.dot(fc_wt, pooled,
                       preferred_element_type=jnp.float32) + fc_b  # (FEAT, 1)

    # --- clr backbone (runs under torch.no_grad() in the reference).
    clr_feat = stem_gap_fc(clr_ref[0], c_cw_ref[...], c_cb_ref[...],
                           c_fw_ref[...], c_fb_ref[...])

    # --- depth branch: fused MaxPool2d(5, stride=1) on the flat (C, H*W)
    # layout via separable XLU lane rotations.  pltpu.roll(x, hw - d, 1)
    # brings element i+d to position i; positions whose 5x5 window wrapped
    # across a row / image boundary are masked out of the GAP below.
    xd = dep_ref[0]                                        # (C, HW)
    m = xd
    for d in range(1, 5):                                  # 5-tap max along W
        m = jnp.maximum(m, pltpu.roll(xd, hw - d, 1))
    p = m
    for d in range(1, 5):                                  # 5-tap max along H
        p = jnp.maximum(p, pltpu.roll(m, hw - d * img_w, 1))
    dep_feat = stem_gap_fc(p, d_cw_ref[...], d_cb_ref[...],
                           d_fw_ref[...], d_fb_ref[...], mask=mask_ref[...])

    # --- regressor head: cat([depth, clr], dim=1) @ W1 in split-weight form.
    h1 = (jnp.dot(w1d_ref[...], dep_feat, preferred_element_type=jnp.float32)
          + jnp.dot(w1c_ref[...], clr_feat, preferred_element_type=jnp.float32)
          + b1_ref[...])
    h1 = jnp.maximum(h1, 0.0)                              # (HID, 1)
    out = (jnp.dot(w2_ref[...], h1, preferred_element_type=jnp.float32)
           + b2_ref[...])                                  # (OUT, 1)
    o_ref[...] = out[None].astype(o_ref.dtype)             # (1, OUT, 1), free


# ----------------------------- forward wrapper ------------------------------

def online_calibration_forward(clrImg, depthImg, params):
    B, C, H, W = clrImg.shape
    assert depthImg.shape == (B, C, H, W)
    assert H >= 5 and W >= 5, "MaxPool2d(5, stride=1) needs H, W >= 5"
    HW = H * W
    Hp, Wp = H - 4, W - 4

    # torch.no_grad() on the clr branch -> stop_gradient (forward unchanged).
    cb = jax.tree_util.tree_map(jax.lax.stop_gradient, params["clr_backbone"])
    clrImg = jax.lax.stop_gradient(clrImg)
    db, rg = params["depth_backbone"], params["regressor"]
    C_MID = cb["conv_w"].shape[1]
    FEAT = cb["fc_w"].shape[1]
    HID = rg["w1"].shape[1]
    OUT = rg["w2"].shape[1]

    f32 = jnp.float32
    col = lambda a: a.reshape(-1, 1).astype(f32)
    tr = lambda a: jnp.transpose(a).astype(f32)

    # NCHW -> (B, C, H*W): a *contiguous* reshape, no transpose / HBM copy.
    clr_flat = clrImg.astype(f32).reshape(B, C, HW)
    dep_flat = depthImg.astype(f32).reshape(B, C, HW)

    # Validity mask for the in-kernel flat 5x5/s1 "VALID" max-pool.
    pix = jnp.arange(HW, dtype=jnp.int32)
    dep_mask = (((pix // W) < Hp) & ((pix % W) < Wp)).astype(f32).reshape(1, HW)

    # Fold the global-average-pool 1/N scale into the fc weights (host-side).
    c_fwt = tr(cb["fc_w"] * (1.0 / HW))                  # (FEAT, C_MID)
    d_fwt = tr(db["fc_w"] * (1.0 / (Hp * Wp)))

    args = (
        clr_flat, dep_flat, dep_mask,
        tr(cb["conv_w"]), col(cb["conv_b"]), c_fwt, col(cb["fc_b"]),
        tr(db["conv_w"]), col(db["conv_b"]), d_fwt, col(db["fc_b"]),
        tr(rg["w1"][:FEAT]), tr(rg["w1"][FEAT:]), col(rg["b1"]),
        tr(rg["w2"]), col(rg["b2"]),
    )

    img_spec = pl.BlockSpec((1, C, HW), lambda b: (b, 0, 0))

    def _const_spec(a):
        nd = a.ndim
        return pl.BlockSpec(a.shape, lambda b, _n=nd: (0,) * _n)

    in_specs = [img_spec, img_spec] + [_const_spec(a) for a in args[2:]]
    out_specs = pl.BlockSpec((1, OUT, 1), lambda b: (b, 0, 0))

    # Advisory cost hint for XLA scheduling around the custom call.
    flops = int(B * (2 * (2 * C * C_MID * HW)            # two conv stems
                     + 8 * C * HW                        # separable maxpool
                     + 2 * (2 * C_MID * FEAT)            # two fc heads
                     + 2 * (2 * FEAT * HID) + 2 * HID * OUT))
    bytes_accessed = int(sum(int(a.size) * 4 for a in args) + B * OUT * 4)
    cost = pl.CostEstimate(flops=flops, transcendentals=0,
                           bytes_accessed=bytes_accessed)

    # VMEM budget: double-buffered image blocks + stem activations + weights,
    # with headroom; capped to fit v7x's 64 MiB physical VMEM.
    weight_bytes = sum(int(a.size) * 4 for a in args[2:])
    vmem_limit = int(min(64 << 20,
                         4 * (2 * C * HW * 4)            # 2 inputs, 2 buffers
                         + 2 * (C_MID * HW * 4)          # stem activations
                         + 2 * weight_bytes + (8 << 20)))

    kernel = functools.partial(_fused_forward_kernel, img_w=W)
    out = pl.pallas_call(
        kernel,
        out_shape=jax.ShapeDtypeStruct((B, OUT, 1), f32),
        grid_spec=pltpu.PrefetchScalarGridSpec(
            num_scalar_prefetch=0,
            grid=(B,),
            in_specs=in_specs,
            out_specs=out_specs,
        ),
        compiler_params=pltpu.CompilerParams(
            # Batch axis is fully independent -> megacore split on v7x.
            dimension_semantics=("parallel",),
            vmem_limit_bytes=vmem_limit,
        ),
        cost_estimate=cost,
    )(*args)
    return out.reshape(B, OUT)


# ----------------------------- params ---------------------------------------

def init_params(key):
    C_IN, C_MID, FEAT, HID, OUT = 3, 32, 128, 64, 7
    ks = jax.random.split(key, 6)

    def w(k, shape, fan_in):
        return jax.random.normal(k, shape, jnp.float32) * (1.0 / jnp.sqrt(fan_in))

    def backbone(k0, k1):
        return {
            "conv_w": w(k0, (C_IN, C_MID), C_IN),
            "conv_b": jnp.zeros((C_MID,), jnp.float32),
            "fc_w": w(k1, (C_MID, FEAT), C_MID),
            "fc_b": jnp.zeros((FEAT,), jnp.float32),
        }

    return {
        "clr_backbone": backbone(ks[0], ks[1]),
        "depth_backbone": backbone(ks[2], ks[3]),
        "regressor": {
            "w1": w(ks[4], (2 * FEAT, HID), 2 * FEAT),
            "b1": jnp.zeros((HID,), jnp.float32),
            "w2": w(ks[5], (HID, OUT), HID),
            "b2": jnp.zeros((OUT,), jnp.float32),
        },
    }


# ----------------------------- pure-JAX reference ----------------------------

def _reference_forward(clrImg, depthImg, params):
    B, C, H, W = clrImg.shape

    def backbone(x_nchw, p, denom):
        b, c, h, w = x_nchw.shape
        x = x_nchw.reshape(b, c, h * w)
        a = jnp.einsum("cm,bcp->bmp", p["conv_w"], x) + p["conv_b"][None, :, None]
        a = jnp.maximum(a, 0.0)
        pooled = jnp.sum(a, axis=-1) / denom
        return pooled @ p["fc_w"] + p["fc_b"]

    mp = jax.lax.reduce_window(depthImg, -jnp.inf, jax.lax.max,
                               (1, 1, 5, 5), (1, 1, 1, 1), "VALID")
    clr_feat = backbone(clrImg, params["clr_backbone"], H * W)
    dep_feat = backbone(mp, params["depth_backbone"], (H - 4) * (W - 4))
    agg = jnp.concatenate([dep_feat, clr_feat], axis=1)
    rg = params["regressor"]
    h1 = jnp.maximum(agg @ rg["w1"] + rg["b1"], 0.0)
    return h1 @ rg["w2"] + rg["b2"]


# ----------------------------- main -----------------------------------------

if __name__ == "__main__":
    key = jax.random.PRNGKey(0)
    kp, kc, kd = jax.random.split(key, 3)
    params = init_params(kp)

    clrImg = jax.random.normal(kc, (2, 3, 16, 16), jnp.float32)    # NCHW
    depthImg = jax.random.normal(kd, (2, 3, 16, 16), jnp.float32)  # NCHW

    fwd = jax.jit(online_calibration_forward)
    pred_transform = jax.block_until_ready(fwd(clrImg, depthImg, params))

    assert pred_transform.shape == (2, 7)
    assert bool(jnp.all(jnp.isfinite(pred_transform)))

    ref = _reference_forward(clrImg, depthImg, params)
    max_err = float(jnp.max(jnp.abs(pred_transform - ref)))
    assert bool(jnp.allclose(pred_transform, ref, rtol=3e-2, atol=3e-2)), max_err

    print("KERNEL_OK")
</pallas_src>

<mosaic_0001>
module attributes {stable_mosaic.version = 11 : i64} {
  func.func @_fused_forward_kernel(%arg0: i32, %arg1: memref<1x3x256xf32, #tpu.memory_space<vmem>>, %arg2: memref<1x3x256xf32, #tpu.memory_space<vmem>>, %arg3: memref<1x256xf32, #tpu.memory_space<vmem>>, %arg4: memref<32x3xf32, #tpu.memory_space<vmem>>, %arg5: memref<32x1xf32, #tpu.memory_space<vmem>>, %arg6: memref<128x32xf32, #tpu.memory_space<vmem>>, %arg7: memref<128x1xf32, #tpu.memory_space<vmem>>, %arg8: memref<32x3xf32, #tpu.memory_space<vmem>>, %arg9: memref<32x1xf32, #tpu.memory_space<vmem>>, %arg10: memref<128x32xf32, #tpu.memory_space<vmem>>, %arg11: memref<128x1xf32, #tpu.memory_space<vmem>>, %arg12: memref<64x128xf32, #tpu.memory_space<vmem>>, %arg13: memref<64x128xf32, #tpu.memory_space<vmem>>, %arg14: memref<64x1xf32, #tpu.memory_space<vmem>>, %arg15: memref<7x64xf32, #tpu.memory_space<vmem>>, %arg16: memref<7x1xf32, #tpu.memory_space<vmem>>, %arg17: memref<1x7x1xf32, #tpu.memory_space<vmem>>) attributes {dimension_semantics = [#tpu.dimension_semantics<parallel>], iteration_bounds = array<i64: 2>, scalar_prefetch = 0 : i64, scratch_operands = 0 : i64, tpu.core_type = #tpu.core_type<tc>, window_params = [{transform_indices = @transform_0, window_bounds = array<i64: 1, 3, 256>}, {transform_indices = @transform_1, window_bounds = array<i64: 1, 3, 256>}, {pipeline_mode = #tpu.pipeline_mode<synchronous>, transform_indices = @transform_2, window_bounds = array<i64: 1, 256>}, {pipeline_mode = #tpu.pipeline_mode<synchronous>, transform_indices = @transform_3, window_bounds = array<i64: 32, 3>}, {pipeline_mode = #tpu.pipeline_mode<synchronous>, transform_indices = @transform_4, window_bounds = array<i64: 32, 1>}, {pipeline_mode = #tpu.pipeline_mode<synchronous>, transform_indices = @transform_5, window_bounds = array<i64: 128, 32>}, {pipeline_mode = #tpu.pipeline_mode<synchronous>, transform_indices = @transform_6, window_bounds = array<i64: 128, 1>}, {pipeline_mode = #tpu.pipeline_mode<synchronous>, transform_indices = @transform_7, window_bounds = array<i64: 32, 3>}, {pipeline_mode = #tpu.pipeline_mode<synchronous>, transform_indices = @transform_8, window_bounds = array<i64: 32, 1>}, {pipeline_mode = #tpu.pipeline_mode<synchronous>, transform_indices = @transform_9, window_bounds = array<i64: 128, 32>}, {pipeline_mode = #tpu.pipeline_mode<synchronous>, transform_indices = @transform_10, window_bounds = array<i64: 128, 1>}, {pipeline_mode = #tpu.pipeline_mode<synchronous>, transform_indices = @transform_11, window_bounds = array<i64: 64, 128>}, {pipeline_mode = #tpu.pipeline_mode<synchronous>, transform_indices = @transform_12, window_bounds = array<i64: 64, 128>}, {pipeline_mode = #tpu.pipeline_mode<synchronous>, transform_indices = @transform_13, window_bounds = array<i64: 64, 1>}, {pipeline_mode = #tpu.pipeline_mode<synchronous>, transform_indices = @transform_14, window_bounds = array<i64: 7, 64>}, {pipeline_mode = #tpu.pipeline_mode<synchronous>, transform_indices = @transform_15, window_bounds = array<i64: 7, 1>}, {transform_indices = @transform_16, window_bounds = array<i64: 1, 7, 1>}]} {
    %c0 = arith.constant 0 : index
    %c0_0 = arith.constant 0 : index
    %c0_1 = arith.constant 0 : index
    %0 = vector.load %arg1[%c0, %c0_0, %c0_1] : memref<1x3x256xf32, #tpu.memory_space<vmem>>, vector<1x3x256xf32>
    %1 = vector.shape_cast %0 : vector<1x3x256xf32> to vector<3x256xf32>
    %c0_2 = arith.constant 0 : index
    %c0_3 = arith.constant 0 : index
    %2 = vector.load %arg4[%c0_2, %c0_3] : memref<32x3xf32, #tpu.memory_space<vmem>>, vector<32x3xf32>
    %c0_4 = arith.constant 0 : index
    %c0_5 = arith.constant 0 : index
    %3 = vector.load %arg5[%c0_4, %c0_5] : memref<32x1xf32, #tpu.memory_space<vmem>>, vector<32x1xf32>
    %c0_6 = arith.constant 0 : index
    %c0_7 = arith.constant 0 : index
    %4 = vector.load %arg6[%c0_6, %c0_7] : memref<128x32xf32, #tpu.memory_space<vmem>>, vector<128x32xf32>
    %c0_8 = arith.constant 0 : index
    %c0_9 = arith.constant 0 : index
    %5 = vector.load %arg7[%c0_8, %c0_9] : memref<128x1xf32, #tpu.memory_space<vmem>>, vector<128x1xf32>
    %6 = vector.extract_strided_slice %2 {offsets = [0, 0], sizes = [32, 1], strides = [1, 1]} : vector<32x3xf32> to vector<32x1xf32>
    %7 = vector.extract_strided_slice %1 {offsets = [0, 0], sizes = [1, 256], strides = [1, 1]} : vector<3x256xf32> to vector<1x256xf32>
    %8 = vector.broadcast %6 : vector<32x1xf32> to vector<32x256xf32>
    %9 = vector.broadcast %7 : vector<1x256xf32> to vector<32x256xf32>
    %10 = arith.mulf %8, %9 : vector<32x256xf32>
    %11 = vector.broadcast %3 : vector<32x1xf32> to vector<32x256xf32>
    %12 = arith.addf %11, %10 : vector<32x256xf32>
    %13 = vector.extract_strided_slice %2 {offsets = [0, 1], sizes = [32, 1], strides = [1, 1]} : vector<32x3xf32> to vector<32x1xf32>
    %14 = vector.extract_strided_slice %1 {offsets = [1, 0], sizes = [1, 256], strides = [1, 1]} : vector<3x256xf32> to vector<1x256xf32>
    %15 = vector.broadcast %13 : vector<32x1xf32> to vector<32x256xf32>
    %16 = vector.broadcast %14 : vector<1x256xf32> to vector<32x256xf32>
    %17 = arith.mulf %15, %16 : vector<32x256xf32>
    %18 = arith.addf %12, %17 : vector<32x256xf32>
    %19 = vector.extract_strided_slice %2 {offsets = [0, 2], sizes = [32, 1], strides = [1, 1]} : vector<32x3xf32> to vector<32x1xf32>
    %20 = vector.extract_strided_slice %1 {offsets = [2, 0], sizes = [1, 256], strides = [1, 1]} : vector<3x256xf32> to vector<1x256xf32>
    %21 = vector.broadcast %19 : vector<32x1xf32> to vector<32x256xf32>
    %22 = vector.broadcast %20 : vector<1x256xf32> to vector<32x256xf32>
    %23 = arith.mulf %21, %22 : vector<32x256xf32>
    %24 = arith.addf %18, %23 : vector<32x256xf32>
    %cst = arith.constant 0.000000e+00 : f32
    %25 = vector.broadcast %cst : f32 to vector<32x256xf32>
    %26 = arith.maximumf %24, %25 : vector<32x256xf32>
    %cst_10 = arith.constant dense<0.000000e+00> : vector<32xf32>
    %27 = vector.multi_reduction <add>, %26, %cst_10 [1] : vector<32x256xf32> to vector<32xf32>
    %28 = vector.shape_cast %27 : vector<32xf32> to vector<32x1xf32>
    %cst_11 = arith.constant dense<0.000000e+00> : vector<128x1xf32>
    %29 = tpu.matmul %4, %28, %cst_11 {dimension_numbers = #tpu.dot_dimension_numbers<[1], [0], [0], [1], [0, 0, 1, 1], [], []>} : vector<128x32xf32>, vector<32x1xf32>, vector<128x1xf32> -> vector<128x1xf32>
    %30 = arith.addf %29, %5 : vector<128x1xf32>
    %c0_12 = arith.constant 0 : index
    %c0_13 = arith.constant 0 : index
    %c0_14 = arith.constant 0 : index
    %31 = vector.load %arg2[%c0_12, %c0_13, %c0_14] : memref<1x3x256xf32, #tpu.memory_space<vmem>>, vector<1x3x256xf32>
    %32 = vector.shape_cast %31 : vector<1x3x256xf32> to vector<3x256xf32>
    %c255_i32 = arith.constant 255 : i32
    %33 = tpu.dynamic_rotate %32 by %c255_i32 dim 1 : vector<3x256xf32>, i32 -> vector<3x256xf32>
    %34 = arith.maximumf %32, %33 : vector<3x256xf32>
    %c254_i32 = arith.constant 254 : i32
    %35 = tpu.dynamic_rotate %32 by %c254_i32 dim 1 : vector<3x256xf32>, i32 -> vector<3x256xf32>
    %36 = arith.maximumf %34, %35 : vector<3x256xf32>
    %c253_i32 = arith.constant 253 : i32
    %37 = tpu.dynamic_rotate %32 by %c253_i32 dim 1 : vector<3x256xf32>, i32 -> vector<3x256xf32>
    %38 = arith.maximumf %36, %37 : vector<3x256xf32>
    %c252_i32 = arith.constant 252 : i32
    %39 = tpu.dynamic_rotate %32 by %c252_i32 dim 1 : vector<3x256xf32>, i32 -> vector<3x256xf32>
    %40 = arith.maximumf %38, %39 : vector<3x256xf32>
    %c240_i32 = arith.constant 240 : i32
    %41 = tpu.dynamic_rotate %40 by %c240_i32 dim 1 : vector<3x256xf32>, i32 -> vector<3x256xf32>
    %42 = arith.maximumf %40, %41 : vector<3x256xf32>
    %c224_i32 = arith.constant 224 : i32
    %43 = tpu.dynamic_rotate %40 by %c224_i32 dim 1 : vector<3x256xf32>, i32 -> vector<3x256xf32>
    %44 = arith.maximumf %42, %43 : vector<3x256xf32>
    %c208_i32 = arith.constant 208 : i32
    %45 = tpu.dynamic_rotate %40 by %c208_i32 dim 1 : vector<3x256xf32>, i32 -> vector<3x256xf32>
    %46 = arith.maximumf %44, %45 : vector<3x256xf32>
    %c192_i32 = arith.constant 192 : i32
    %47 = tpu.dynamic_rotate %40 by %c192_i32 dim 1 : vector<3x256xf32>, i32 -> vector<3x256xf32>
    %48 = arith.maximumf %46, %47 : vector<3x256xf32>
    %c0_15 = arith.constant 0 : index
    %c0_16 = arith.constant 0 : index
    %49 = vector.load %arg8[%c0_15, %c0_16] : memref<32x3xf32, #tpu.memory_space<vmem>>, vector<32x3xf32>
    %c0_17 = arith.constant 0 : index
    %c0_18 = arith.constant 0 : index
    %50 = vector.load %arg9[%c0_17, %c0_18] : memref<32x1xf32, #tpu.memory_space<vmem>>, vector<32x1xf32>
    %c0_19 = arith.constant 0 : index
    %c0_20 = arith.constant 0 : index
    %51 = vector.load %arg10[%c0_19, %c0_20] : memref<128x32xf32, #tpu.memory_space<vmem>>, vector<128x32xf32>
    %c0_21 = arith.constant 0 : index
    %c0_22 = arith.constant 0 : index
    %52 = vector.load %arg11[%c0_21, %c0_22] : memref<128x1xf32, #tpu.memory_space<vmem>>, vector<128x1xf32>
    %c0_23 = arith.constant 0 : index
    %c0_24 = arith.constant 0 : index
    %53 = vector.load %arg3[%c0_23, %c0_24] : memref<1x256xf32, #tpu.memory_space<vmem>>, vector<1x256xf32>
    %54 = vector.extract_strided_slice %49 {offsets = [0, 0], sizes = [32, 1], strides = [1, 1]} : vector<32x3xf32> to vector<32x1xf32>
    %55 = vector.extract_strided_slice %48 {offsets = [0, 0], sizes = [1, 256], strides = [1, 1]} : vector<3x256xf32> to vector<1x256xf32>
    %56 = vector.broadcast %54 : vector<32x1xf32> to vector<32x256xf32>
    %57 = vector.broadcast %55 : vector<1x256xf32> to vector<32x256xf32>
    %58 = arith.mulf %56, %57 : vector<32x256xf32>
    %59 = vector.broadcast %50 : vector<32x1xf32> to vector<32x256xf32>
    %60 = arith.addf %59, %58 : vector<32x256xf32>
    %61 = vector.extract_strided_slice %49 {offsets = [0, 1], sizes = [32, 1], strides = [1, 1]} : vector<32x3xf32> to vector<32x1xf32>
    %62 = vector.extract_strided_slice %48 {offsets = [1, 0], sizes = [1, 256], strides = [1, 1]} : vector<3x256xf32> to vector<1x256xf32>
    %63 = vector.broadcast %61 : vector<32x1xf32> to vector<32x256xf32>
    %64 = vector.broadcast %62 : vector<1x256xf32> to vector<32x256xf32>
    %65 = arith.mulf %63, %64 : vector<32x256xf32>
    %66 = arith.addf %60, %65 : vector<32x256xf32>
    %67 = vector.extract_strided_slice %49 {offsets = [0, 2], sizes = [32, 1], strides = [1, 1]} : vector<32x3xf32> to vector<32x1xf32>
    %68 = vector.extract_strided_slice %48 {offsets = [2, 0], sizes = [1, 256], strides = [1, 1]} : vector<3x256xf32> to vector<1x256xf32>
    %69 = vector.broadcast %67 : vector<32x1xf32> to vector<32x256xf32>
    %70 = vector.broadcast %68 : vector<1x256xf32> to vector<32x256xf32>
    %71 = arith.mulf %69, %70 : vector<32x256xf32>
    %72 = arith.addf %66, %71 : vector<32x256xf32>
    %cst_25 = arith.constant 0.000000e+00 : f32
    %73 = vector.broadcast %cst_25 : f32 to vector<32x256xf32>
    %74 = arith.maximumf %72, %73 : vector<32x256xf32>
    %75 = vector.broadcast %53 : vector<1x256xf32> to vector<32x256xf32>
    %76 = arith.mulf %74, %75 : vector<32x256xf32>
    %cst_26 = arith.constant dense<0.000000e+00> : vector<32xf32>
    %77 = vector.multi_reduction <add>, %76, %cst_26 [1] : vector<32x256xf32> to vector<32xf32>
    %78 = vector.shape_cast %77 : vector<32xf32> to vector<32x1xf32>
    %cst_27 = arith.constant dense<0.000000e+00> : vector<128x1xf32>
    %79 = tpu.matmul %51, %78, %cst_27 {dimension_numbers = #tpu.dot_dimension_numbers<[1], [0], [0], [1], [0, 0, 1, 1], [], []>} : vector<128x32xf32>, vector<32x1xf32>, vector<128x1xf32> -> vector<128x1xf32>
    %80 = arith.addf %79, %52 : vector<128x1xf32>
    %c0_28 = arith.constant 0 : index
    %c0_29 = arith.constant 0 : index
    %81 = vector.load %arg12[%c0_28, %c0_29] : memref<64x128xf32, #tpu.memory_space<vmem>>, vector<64x128xf32>
    %cst_30 = arith.constant dense<0.000000e+00> : vector<64x1xf32>
    %82 = tpu.matmul %81, %80, %cst_30 {dimension_numbers = #tpu.dot_dimension_numbers<[1], [0], [0], [1], [0, 0, 1, 1], [], []>} : vector<64x128xf32>, vector<128x1xf32>, vector<64x1xf32> -> vector<64x1xf32>
    %c0_31 = arith.constant 0 : index
    %c0_32 = arith.constant 0 : index
    %83 = vector.load %arg13[%c0_31, %c0_32] : memref<64x128xf32, #tpu.memory_space<vmem>>, vector<64x128xf32>
    %cst_33 = arith.constant dense<0.000000e+00> : vector<64x1xf32>
    %84 = tpu.matmul %83, %30, %cst_33 {dimension_numbers = #tpu.dot_dimension_numbers<[1], [0], [0], [1], [0, 0, 1, 1], [], []>} : vector<64x128xf32>, vector<128x1xf32>, vector<64x1xf32> -> vector<64x1xf32>
    %85 = arith.addf %82, %84 : vector<64x1xf32>
    %c0_34 = arith.constant 0 : index
    %c0_35 = arith.constant 0 : index
    %86 = vector.load %arg14[%c0_34, %c0_35] : memref<64x1xf32, #tpu.memory_space<vmem>>, vector<64x1xf32>
    %87 = arith.addf %85, %86 : vector<64x1xf32>
    %cst_36 = arith.constant 0.000000e+00 : f32
    %88 = vector.broadcast %cst_36 : f32 to vector<64x1xf32>
    %89 = arith.maximumf %87, %88 : vector<64x1xf32>
    %c0_37 = arith.constant 0 : index
    %c0_38 = arith.constant 0 : index
    %90 = vector.load %arg15[%c0_37, %c0_38] : memref<7x64xf32, #tpu.memory_space<vmem>>, vector<7x64xf32>
    %cst_39 = arith.constant dense<0.000000e+00> : vector<7x1xf32>
    %91 = tpu.matmul %90, %89, %cst_39 {dimension_numbers = #tpu.dot_dimension_numbers<[1], [0], [0], [1], [0, 0, 1, 1], [], []>} : vector<7x64xf32>, vector<64x1xf32>, vector<7x1xf32> -> vector<7x1xf32>
    %c0_40 = arith.constant 0 : index
    %c0_41 = arith.constant 0 : index
    %92 = vector.load %arg16[%c0_40, %c0_41] : memref<7x1xf32, #tpu.memory_space<vmem>>, vector<7x1xf32>
    %93 = arith.addf %91, %92 : vector<7x1xf32>
    %94 = vector.shape_cast %93 : vector<7x1xf32> to vector<1x7x1xf32>
    %c0_42 = arith.constant 0 : index
    %c0_43 = arith.constant 0 : index
    %c0_44 = arith.constant 0 : index
    %95 = vector.load %arg17[%c0_42, %c0_43, %c0_44] : memref<1x7x1xf32, #tpu.memory_space<vmem>>, vector<1x7x1xf32>
    tpu.vector_store %arg17[%c0_42, %c0_43, %c0_44], %94 {strides = array<i32>} : memref<1x7x1xf32, #tpu.memory_space<vmem>>, vector<1x7x1xf32>,
    return
  }
  func.func @transform_0(%arg0: i32) -> (i32, i32, i32) {
    %c0_i32 = arith.constant 0 : i32
    %c0_i32_0 = arith.constant 0 : i32
    %c0_i32_1 = arith.constant 0 : i32
    return %arg0, %c0_i32, %c0_i32_0 : i32, i32, i32
  }
  func.func @transform_1(%arg0: i32) -> (i32, i32, i32) {
    %c0_i32 = arith.constant 0 : i32
    %c0_i32_0 = arith.constant 0 : i32
    %c0_i32_1 = arith.constant 0 : i32
    return %arg0, %c0_i32, %c0_i32_0 : i32, i32, i32
  }
  func.func @transform_2(%arg0: i32) -> (i32, i32) {
    %c0_i32 = arith.constant 0 : i32
    %c0_i32_0 = arith.constant 0 : i32
    %c0_i32_1 = arith.constant 0 : i32
    return %c0_i32, %c0_i32_0 : i32, i32
  }
  func.func @transform_3(%arg0: i32) -> (i32, i32) {
    %c0_i32 = arith.constant 0 : i32
    %c0_i32_0 = arith.constant 0 : i32
    %c0_i32_1 = arith.constant 0 : i32
    return %c0_i32, %c0_i32_0 : i32, i32
  }
  func.func @transform_4(%arg0: i32) -> (i32, i32) {
    %c0_i32 = arith.constant 0 : i32
    %c0_i32_0 = arith.constant 0 : i32
    %c0_i32_1 = arith.constant 0 : i32
    return %c0_i32, %c0_i32_0 : i32, i32
  }
  func.func @transform_5(%arg0: i32) -> (i32, i32) {
    %c0_i32 = arith.constant 0 : i32
    %c0_i32_0 = arith.constant 0 : i32
    %c0_i32_1 = arith.constant 0 : i32
    return %c0_i32, %c0_i32_0 : i32, i32
  }
  func.func @transform_6(%arg0: i32) -> (i32, i32) {
    %c0_i32 = arith.constant 0 : i32
    %c0_i32_0 = arith.constant 0 : i32
    %c0_i32_1 = arith.constant 0 : i32
    return %c0_i32, %c0_i32_0 : i32, i32
  }
  func.func @transform_7(%arg0: i32) -> (i32, i32) {
    %c0_i32 = arith.constant 0 : i32
    %c0_i32_0 = arith.constant 0 : i32
    %c0_i32_1 = arith.constant 0 : i32
    return %c0_i32, %c0_i32_0 : i32, i32
  }
  func.func @transform_8(%arg0: i32) -> (i32, i32) {
    %c0_i32 = arith.constant 0 : i32
    %c0_i32_0 = arith.constant 0 : i32
    %c0_i32_1 = arith.constant 0 : i32
    return %c0_i32, %c0_i32_0 : i32, i32
  }
  func.func @transform_9(%arg0: i32) -> (i32, i32) {
    %c0_i32 = arith.constant 0 : i32
    %c0_i32_0 = arith.constant 0 : i32
    %c0_i32_1 = arith.constant 0 : i32
    return %c0_i32, %c0_i32_0 : i32, i32
  }
  func.func @transform_10(%arg0: i32) -> (i32, i32) {
    %c0_i32 = arith.constant 0 : i32
    %c0_i32_0 = arith.constant 0 : i32
    %c0_i32_1 = arith.constant 0 : i32
    return %c0_i32, %c0_i32_0 : i32, i32
  }
  func.func @transform_11(%arg0: i32) -> (i32, i32) {
    %c0_i32 = arith.constant 0 : i32
    %c0_i32_0 = arith.constant 0 : i32
    %c0_i32_1 = arith.constant 0 : i32
    return %c0_i32, %c0_i32_0 : i32, i32
  }
  func.func @transform_12(%arg0: i32) -> (i32, i32) {
    %c0_i32 = arith.constant 0 : i32
    %c0_i32_0 = arith.constant 0 : i32
    %c0_i32_1 = arith.constant 0 : i32
    return %c0_i32, %c0_i32_0 : i32, i32
  }
  func.func @transform_13(%arg0: i32) -> (i32, i32) {
    %c0_i32 = arith.constant 0 : i32
    %c0_i32_0 = arith.constant 0 : i32
    %c0_i32_1 = arith.constant 0 : i32
    return %c0_i32, %c0_i32_0 : i32, i32
  }
  func.func @transform_14(%arg0: i32) -> (i32, i32) {
    %c0_i32 = arith.constant 0 : i32
    %c0_i32_0 = arith.constant 0 : i32
    %c0_i32_1 = arith.constant 0 : i32
    return %c0_i32, %c0_i32_0 : i32, i32
  }
  func.func @transform_15(%arg0: i32) -> (i32, i32) {
    %c0_i32 = arith.constant 0 : i32
    %c0_i32_0 = arith.constant 0 : i32
    %c0_i32_1 = arith.constant 0 : i32
    return %c0_i32, %c0_i32_0 : i32, i32
  }
  func.func @transform_16(%arg0: i32) -> (i32, i32, i32) {
    %c0_i32 = arith.constant 0 : i32
    %c0_i32_0 = arith.constant 0 : i32
    %c0_i32_1 = arith.constant 0 : i32
    return %arg0, %c0_i32, %c0_i32_0 : i32, i32, i32
  }
}

</mosaic_0001>

<bundles_post_ra>
// kernel: online_calibration_forward.1
= control target key start
LH: loop header
LB: loop body
LE: loop exit
PB: predicated region body
PF: predicated region fallthrough
CT: control target
= control target key end

     0   :  { %s2477_s21 = smov 0   ;;  %s3097_s0 = inlined_call_operand.vmem [shape: f32[2,3,256], index: 0, kind: input, shape index: {}]   ;;  %s3098_s1 = inlined_call_operand.vmem [shape: f32[2,3,256], index: 1, kind: input, shape index: {}]   ;;  %s3099_s2 = inlined_call_operand.vmem [shape: f32[1,256], index: 2, kind: input, shape index: {}]   ;;  %s3100_s3 = inlined_call_operand.vmem [shape: f32[32,3], index: 3, kind: input, shape index: {}]   ;;  %s3101_s4 = inlined_call_operand.vmem [shape: f32[32,1], index: 4, kind: input, shape index: {}]   ;;  %s3102_s5 = inlined_call_operand.vmem [shape: f32[128,32], index: 5, kind: input, shape index: {}]   ;;  %s3103_s6 = inlined_call_operand.vmem [shape: f32[128,1], index: 6, kind: input, shape index: {}]   ;;  %s3104_s7 = inlined_call_operand.vmem [shape: f32[32,3], index: 7, kind: input, shape index: {}]   ;;  %s3105_s8 = inlined_call_operand.vmem [shape: f32[32,1], index: 8, kind: input, shape index: {}]   ;;  %s3106_s9 = inlined_call_operand.vmem [shape: f32[128,32], index: 9, kind: input, shape index: {}]   ;;  %s3107_s10 = inlined_call_operand.vmem [shape: f32[128,1], index: 10, kind: input, shape index: {}]   ;;  %s3108_s11 = inlined_call_operand.vmem [shape: f32[64,128], index: 11, kind: input, shape index: {}]   ;;  %s3109_s12 = inlined_call_operand.vmem [shape: f32[64,128], index: 12, kind: input, shape index: {}]   ;;  %s3110_s13 = inlined_call_operand.vmem [shape: f32[64,1], index: 13, kind: input, shape index: {}]   ;;  %s3111_s14 = inlined_call_operand.vmem [shape: f32[7,64], index: 14, kind: input, shape index: {}]   ;;  %s3112_s15 = inlined_call_operand.vmem [shape: f32[7,1], index: 15, kind: input, shape index: {}]   ;;  %s3113_s16 = inlined_call_operand.vmem [shape: f32[2,7,1], index: 16, kind: output, shape index: {}]  }
   0x1   :  { %3114 = sst [smem:[#allocation2_spill]] %s3097_s0 }
   0x2 LB: > { %s1916_s22 = sadd.s32 4294967295, %s2376_s21   ;;  %p1920_p0 = scmp.ge.s32.totalorder %s2376_s21, 1  ;;  %s2376_s21 = sphi %s2477_s21, %s26_s21  }
   0x3   : > { %p472_p1 = scmp.lt.s32.totalorder %s2376_s21, 3 }
   0x5   : > { %p473_p2 = pnand %p1920_p0, %p472_p1 }
   0x6   : > { %p526_p3 = scmp.lt.s32.totalorder (!%p473_p2), %s1916_s22, 1  ;;  %v2378_v0 = vmov (!%p473_p2), 0   ;;  %s2379_s27 = smov (!%p473_p2), 126   ;;  %v1076_v3 = vld [vmem:[%s3104_s7 + $0x8] sm:$0xff] (!%p473_p2)  ;;  %v1075_v4 = vld [vmem:[%s3104_s7] sm:$0xff] (!%p473_p2)  ;;  %v2525_v9 = vld [vmem:[%s3104_s7 + $0x10] sm:$0xff] (!%p473_p2)  ;;  %v602_v21 = vlaneseq (!%p473_p2) }
   0x7   : > { %476 = sbr.rel (%p473_p2) target bundleno = 1169 (0x491), region = 84  ;;  %2354 = vset.pattern.permute.xlu1 (!%p473_p2), %v2378_v0  ;;  %2353 = vset.pattern.permute.xlu0 (!%p473_p2), %v2378_v0  ;;  %s2380_s28 = smov (!%p473_p2), 127   ;;  %v2510_v5 = vld [vmem:[%s3100_s3] sm:$0xff] (!%p473_p2)  ;;  %v542_v6 = vld [vmem:[%s3100_s3 + $0x8] sm:$0xff] (!%p473_p2)  ;;  %v2383_v10 = vmov (!%p473_p2), 1   ;;  %v1081_v11 = vld [vmem:[%s3105_s8 + $0x10] sm:$0xff] (!%p473_p2) }
   0x8   : > { %s2381_s29 = smov (!%p473_p2), 125   ;;  %s2382_s30 = smov (!%p473_p2), 124   ;;  %v1079_v7 = vld [vmem:[%s3105_s8] sm:$0xff] (!%p473_p2)  ;;  %v1080_v8 = vld [vmem:[%s3105_s8 + $0x8] sm:$0xff] (!%p473_p2)  ;;  %v2542_v14 = vld [vmem:[%s3104_s7 + $0x18] sm:$0xff] (!%p473_p2)  ;;  %v2384_v16 = vmov (!%p473_p2), 2  }
   0x9   : > { %v545_v12 = vld [vmem:[%s3101_s4] sm:$0xff] (!%p473_p2)  ;;  %v546_v13 = vld [vmem:[%s3101_s4 + $0x8] sm:$0xff] (!%p473_p2)  ;;  %v2550_v15 = vld [vmem:[%s3100_s3 + $0x10] sm:$0xff] (!%p473_p2)  ;;  %v2576_v22 = vand.u32 (!%p473_p2), 127, %v602_v21  ;;  %s2385_s24 = smov (!%p473_p2), 112   ;;  %v2588_v48 = vshrl.u32 (!%p473_p2), %v602_v21, 7 }
   0xa   : > { %v2560_v17 = vld [vmem:[%s3100_s3 + $0x18] sm:$0xff] (!%p473_p2)  ;;  %v547_v19 = vld [vmem:[%s3101_s4 + $0x10] sm:$0xff] (!%p473_p2)  ;;  %s2388_s0 = smov (!%p473_p2), 64   ;;  %vm776_vm8 = vcmask (!%p473_p2), 261120   ;;  %vm2390_vm9 = vmmov (!%p473_p2), 0   ;;  %vm1775_vm10 = vcmask (!%p473_p2), 523264  }
   0xb   : > { %v1082_v18 = vld [vmem:[%s3105_s8 + $0x18] sm:$0xff] (!%p473_p2)  ;;  %vm992_vm0 = vcmp.lt.s32.totalorder (!%p473_p2), %v2576_v22, 126  ;;  %vm980_vm1 = vcmp.lt.s32.totalorder (!%p473_p2), %v2576_v22, 127  ;;  %vm1004_vm2 = vcmp.lt.s32.totalorder (!%p473_p2), %v2576_v22, 125  ;;  %vm1016_vm3 = vcmp.lt.s32.totalorder (!%p473_p2), %v2576_v22, 124 }
   0xc   : > { %v548_v20 = vld [vmem:[%s3101_s4 + $0x18] sm:$0xff] (!%p473_p2)  ;;  %v2596_v49 = vsub.s32 (!%p473_p2), 0, %v2588_v48  ;;  %v608_v50 = vsub.s32 (!%p473_p2), 4, %v2588_v48  ;;  %vm1031_vm4 = vcmp.lt.s32.totalorder (!%p473_p2), %v2576_v22, 112  ;;  %vm1043_vm5 = vcmp.lt.s32.totalorder (!%p473_p2), %v2576_v22, 96 }
   0xd   : > { %vm1055_vm6 = vcmp.lt.s32.totalorder (!%p473_p2), %v2576_v22, 80  ;;  %vm1067_vm7 = vcmp.lt.s32.totalorder (!%p473_p2), %v2576_v22, 64  ;;  %vm1849_vm11 = vcmask (!%p473_p2), 6144  }
   0xe   : > { %s3117_s22 = smov (!%p526_p3, %s1916_s22), 1 }
   0xf   : > { %s2487_s23 = sshll.u32 %s3117_s22, 3 }
  0x10   : > { %s535_s26 = scalar_lea.vmem %s3098_s1, %s2487_s23  ;;  %s539_s19 = scalar_lea.vmem %s3113_s16, %s2487_s23 }
  0x11   : > { %v2493_v1 = vld [vmem:[%s535_s26] sm:$0x77] }
  0x12   : > { %988 = vrot.lane.b32.xlu1 %v2493_v1, %s2379_s27  ;;  %974 = vrot.lane.b32.xlu0 %v2493_v1, %s2380_s28  ;;  %v972_v2 = vcombine.high %v2493_v1, %v2493_v1 }
  0x16   : > { %990 = vrot.lane.b32.xlu1 %v972_v2, %s2379_s27  ;;  %976 = vrot.lane.b32.xlu0 %v972_v2, %s2380_s28  ;;  %s3115_s27 = sld [smem:[#allocation2_spill]] }
  0x1a   : > { %1002 = vrot.lane.b32.xlu1 %v972_v2, %s2381_s29  ;;  %1000 = vrot.lane.b32.xlu0 %v2493_v1, %s2381_s29  ;;  %s2386_s29 = smov 96  }
  0x1c   : > { %s530_s28 = scalar_lea.vmem %s3115_s27, %s2487_s23 }
  0x1d   : > { %v540_v51 = vld [vmem:[%s530_s28] sm:$0x77] }
  0x1e   : > { %1014 = vrot.lane.b32.xlu1 %v972_v2, %s2382_s30  ;;  %1012 = vrot.lane.b32.xlu0 %v2493_v1, %s2382_s30  ;;  %s2387_s30 = smov 80   ;;  %v605_v52 = vrot.slane %v540_v51, %v2596_v49  ;;  %v609_v53 = vrot.slane %v540_v51, %v608_v50 }
  0x20   : > { %v615_v55 = vrot.slane %v605_v52, %v2596_v49  ;;  %v619_v56 = vrot.slane %v609_v53, %v2596_v49 }
  0x22   : > { %1123 = vperm.xlu1 %2354, %v1076_v3   ;;  %1118 = vperm.xlu0 %2353, %v1075_v4  }
  0x26   : > { %583 = vperm.xlu1 %2354, %v2510_v5   ;;  %588 = vperm.xlu0 %2353, %v542_v6  }
  0x2a   : > { %1165 = vperm.xlu1 %2354, %v1079_v7   ;;  %1170 = vperm.xlu0 %2353, %v1080_v8  }
  0x2e   : > { %2355 = vset.pattern.permute.xlu1 %v2383_v10  ;;  %1128 = vperm.xlu0 %2353, %v2525_v9  }
  0x2f   : > { %1192 = vperm.xlu1 %2355, %v1075_v4  }
  0x32   : > { %1175 = vperm.xlu0 %2353, %v1081_v11   ;;  %v728_v11 = vsub.s32 6, %v2588_v48 }
  0x33   : > { %2356 = vset.pattern.permute.xlu1 %v2378_v0 }
  0x34   : > { %630 = vperm.xlu1 %2356, %v545_v12   ;;  %v729_v21 = vrot.slane %v540_v51, %v728_v11 }
  0x36   : > { %2362 = vset.pattern.permute.xlu0 %v2383_v10 }
  0x37   : > { %1196 = vperm.xlu0 %2362, %v1076_v3  }
  0x38   : > { %635 = vperm.xlu1 %2356, %v546_v13  }
  0x3b   : > { %657 = vperm.xlu0 %2362, %v2510_v5  }
  0x3c   : > { %2357 = vset.pattern.permute.xlu1 %v2383_v10 }
  0x3d   : > { %661 = vperm.xlu1 %2357, %v542_v6  }
  0x3f   : > { %1204 = vperm.xlu0 %2362, %v2542_v14  }
  0x41   : > { %2358 = vset.pattern.permute.xlu1 %v2378_v0 }
  0x42   : > { %1133 = vperm.xlu1 %2358, %v2542_v14  }
  0x43   : > { %665 = vperm.xlu0 %2362, %v2550_v15  }
  0x46   : > { %2359 = vset.pattern.permute.xlu1 %v2384_v16 }
  0x47   : > { %1242 = vperm.xlu1 %2359, %v1075_v4   ;;  %2366 = vset.pattern.permute.xlu0 %v2384_v16 }
  0x48   : > { %1246 = vperm.xlu0 %2366, %v1076_v3  }
  0x4b   : > { %2360 = vset.pattern.permute.xlu1 %v2378_v0 }
  0x4c   : > { %593 = vperm.xlu1 %2360, %v2550_v15  }
  0x50   : > { %598 = vperm.xlu1 %2360, %v2560_v17  }
  0x54   : > { %2361 = vset.pattern.permute.xlu1 %v2384_v16 }
  0x55   : > { %711 = vperm.xlu1 %2361, %v542_v6   ;;  %v678_v6 = vsub.s32 5, %v2588_v48 }
  0x59   : > { %2363 = vset.pattern.permute.xlu1 %v2378_v0 }
  0x5a   : > { %1180 = vperm.xlu1 %2363, %v1082_v18  }
  0x5e   : > { %2364 = vset.pattern.permute.xlu1 %v2383_v10 }
  0x5f   : > { %1200 = vperm.xlu1 %2364, %v2525_v9  }
  0x63   : > { %2365 = vset.pattern.permute.xlu1 %v2378_v0 }
  0x64   : > { %640 = vperm.xlu1 %2365, %v547_v19  }
  0x68   : > { %645 = vperm.xlu1 %2365, %v548_v20  }
  0x6c   : > { %2367 = vset.pattern.permute.xlu1 %v2383_v10  ;;  %v2637_v10 = vsub.s32 2, %v2588_v48 }
  0x6e   : > { %v725_v20 = vrot.slane %v540_v51, %v2637_v10 }
  0x84   : > { %v989_v23 = vpop.permute.xlu1 %988  ;;  %v975_v24 = vpop.permute.xlu0 %974 }
  0x88   : > { %v991_v25 = vpop.permute.xlu1 %990  ;;  %v977_v26 = vpop.permute.xlu0 %976 }
  0x89   : > { %v993_v27 = vsel %vm992_vm0, %v989_v23, %v991_v25  ;;  %v994_v28 = vsel %vm992_vm0, %v991_v25, %v989_v23  ;;  %v981_v29 = vsel %vm980_vm1, %v975_v24, %v977_v26  ;;  %v982_v30 = vsel %vm980_vm1, %v977_v26, %v975_v24 }
  0x8a   : > { %v985_v31 = vcombine.low %v981_v29, %v982_v30  ;;  %v997_v32 = vcombine.low %v993_v27, %v994_v28  ;;  %v2660_v30 = vrot.slane %v725_v20, %v2637_v10 }
  0x8c   : > { %v987_v33 = vmax.f32 %v2493_v1, %v985_v31  ;;  %v1003_v34 = vpop.permute.xlu1 %1002  ;;  %v1001_v35 = vpop.permute.xlu0 %1000  ;;  %v2663_v31 = vrot.slane %v729_v21, %v2637_v10 }
  0x8d   : > { %v1005_v36 = vsel %vm1004_vm2, %v1001_v35, %v1003_v34  ;;  %v1006_v37 = vsel %vm1004_vm2, %v1003_v34, %v1001_v35 }
  0x8e   : > { %v999_v38 = vmax.f32 %v987_v33, %v997_v32  ;;  %v1009_v39 = vcombine.low %v1005_v36, %v1006_v37 }
  0x90   : > { %v1015_v40 = vpop.permute.xlu1 %1014  ;;  %v1013_v41 = vpop.permute.xlu0 %1012  ;;  %v1011_v44 = vmax.f32 %v999_v38, %v1009_v39 }
  0x91   : > { %v1017_v42 = vsel %vm1016_vm3, %v1013_v41, %v1015_v40  ;;  %v1018_v43 = vsel %vm1016_vm3, %v1015_v40, %v1013_v41 }
  0x92   : > { %v1021_v45 = vcombine.low %v1017_v42, %v1018_v43 }
  0x94   : > { %v2583_v46 = vmax.f32 %v1011_v44, %v1021_v45 }
  0x96   : > { %1027 = vrot.lane.b32.xlu0 %v2583_v46, %s2385_s24  ;;  %v1025_v47 = vcombine.high %v2583_v46, %v2583_v46 }
  0x98   : > { %1029 = vrot.lane.b32.xlu1 %v1025_v47, %s2385_s24 }
  0x9a   : > { %1039 = vrot.lane.b32.xlu0 %v2583_v46, %s2386_s29 }
  0x9c   : > { %1041 = vrot.lane.b32.xlu1 %v1025_v47, %s2386_s29 }
  0x9e   : > { %1051 = vrot.lane.b32.xlu0 %v2583_v46, %s2387_s30 }
  0xa0   : > { %1053 = vrot.lane.b32.xlu1 %v1025_v47, %s2387_s30 }
  0xa1   : > { %v2603_v54 = vpop.permute.xlu1 %1123  ;;  %v2625_v4 = vpop.permute.xlu0 %1118 }
  0xa2   : > { %1063 = vrot.lane.b32.xlu0 %v2583_v46, %s2388_s0 }
  0xa4   : > { %1065 = vrot.lane.b32.xlu1 %v1025_v47, %s2388_s0 }
  0xa5   : > { %v584_v57 = vpop.permute.xlu1 %583  ;;  %v589_v12 = vpop.permute.xlu0 %588 }
  0xa6   : > { %707 = vperm.xlu0 %2366, %v2510_v5   ;;  %v620_v58 = vmul.f32 %v615_v55, %v584_v57  ;;  %v621_v59 = vmul.f32 %v619_v56, %v584_v57  ;;  %v2628_v5 = vsub.s32 1, %v2588_v48  ;;  %v622_v13 = vmul.f32 %v615_v55, %v589_v12 }
  0xa8   : > { %669 = vperm.xlu1 %2367, %v2560_v17   ;;  %v675_v8 = vrot.slane %v540_v51, %v2628_v5 }
  0xa9   : > { %v2610_v60 = vpop.permute.xlu1 %1165  ;;  %v2667_v42 = vpop.permute.xlu0 %1170 }
  0xaa   : > { %1250 = vperm.xlu0 %2366, %v2525_v9   ;;  %v679_v9 = vrot.slane %v540_v51, %v678_v6  ;;  %v2645_v18 = vrot.slane %v675_v8, %v2628_v5 }
  0xac   : > { %2368 = vset.pattern.permute.xlu1 %v2384_v16  ;;  %v2648_v19 = vrot.slane %v679_v9, %v2628_v5 }
  0xad   : > { %1254 = vperm.xlu1 %2368, %v2542_v14   ;;  %v623_v14 = vmul.f32 %v619_v56, %v589_v12  ;;  %v2669_v43 = vpop.permute.xlu0 %1128 }
  0xae   : > { %719 = vperm.xlu0 %2366, %v2560_v17   ;;  %v2616_v61 = vpop.permute.xlu1 %1192 }
  0xb1   : > { %715 = vperm.xlu1 %2368, %v2550_v15   ;;  %v2671_v44 = vpop.permute.xlu0 %1175 }
  0xb3   : > { %v631_v62 = vpop.permute.xlu1 %630 }
  0xb4   : > { %v2619_v63 = vadd.f32 %v631_v62, %v620_v58  ;;  %v2621_v0 = vadd.f32 %v631_v62, %v621_v59 }
  0xb6   : > { %v2673_v45 = vpop.permute.xlu0 %1196 }
  0xb7   : > { %v636_v1 = vpop.permute.xlu1 %635 }
  0xb8   : > { %v650_v23 = vadd.f32 %v636_v1, %v622_v13  ;;  %v651_v24 = vadd.f32 %v636_v1, %v623_v14 }
  0xba   : > { %v658_v47 = vpop.permute.xlu0 %657 }
  0xbc   : > { %v662_v2 = vpop.permute.xlu1 %661 }
  0xbd   : > { %v692_v25 = vmul.f32 %v2645_v18, %v662_v2  ;;  %v693_v26 = vmul.f32 %v2648_v19, %v662_v2 }
  0xbe   : > { %v2677_v52 = vpop.permute.xlu0 %1204 }
  0xbf   : > { %v700_v32 = vadd.f32 %v692_v25, %v650_v23  ;;  %v701_v33 = vadd.f32 %v693_v26, %v651_v24 }
  0xc1   : > { %v2623_v3 = vpop.permute.xlu1 %1133 }
  0xc6   : > { %v2631_v7 = vpop.permute.xlu1 %1242 }
  0xcb   : > { %v594_v15 = vpop.permute.xlu1 %593 }
  0xcc   : > { %v2640_v16 = vmul.f32 %v615_v55, %v594_v15  ;;  %v2642_v17 = vmul.f32 %v619_v56, %v594_v15 }
  0xcf   : > { %v599_v27 = vpop.permute.xlu1 %598 }
  0xd0   : > { %v2655_v28 = vmul.f32 %v615_v55, %v599_v27  ;;  %v2657_v29 = vmul.f32 %v619_v56, %v599_v27  ;;  %v666_v55 = vpop.permute.xlu0 %665 }
  0xd4   : > { %v712_v34 = vpop.permute.xlu1 %711  ;;  %v2681_v57 = vpop.permute.xlu0 %1246 }
  0xd5   : > { %v742_v35 = vmul.f32 %v2660_v30, %v712_v34  ;;  %v743_v36 = vmul.f32 %v2663_v31, %v712_v34 }
  0xd7   : > { %v750_v37 = vadd.f32 %v742_v35, %v700_v32  ;;  %v751_v38 = vadd.f32 %v743_v36, %v701_v33 }
  0xd9   : > { %v758_v39 = vmax.f32 %v750_v37, 0.0  ;;  %v759_v40 = vmax.f32 %v751_v38, 0.0  ;;  %v2675_v51 = vpop.permute.xlu1 %1180  ;;  %v690_v38 = vmul.f32 %v2645_v18, %v658_v47 }
  0xdb   : > { %v767_v41 = vadd.f32 %v759_v40, %v758_v39  ;;  %v691_v39 = vmul.f32 %v2648_v19, %v658_v47 }
  0xdd   : > { %768 = vadd.xlane.f32.xlu0 %v767_v41  ;;  %v1115_v41 = vld [vmem:[%s3099_s2] sm:$0x3] }
  0xde   : > { %v2679_v53 = vpop.permute.xlu1 %1200 }
  0xe3   : > { %v641_v56 = vpop.permute.xlu1 %640 }
  0xe4   : > { %v653_v22 = vadd.f32 %v641_v56, %v2642_v17 }
  0xe7   : > { %v2683_v58 = vpop.permute.xlu1 %645 }
 0x108   : > { %v1028_v59 = vpop.permute.xlu0 %1027 }
 0x10a   : > { %v1030_v62 = vpop.permute.xlu1 %1029 }
 0x10b   : > { %v1032_v2 = vsel %vm1031_vm4, %v1028_v59, %v1030_v62  ;;  %v1033_v8 = vsel %vm1031_vm4, %v1030_v62, %v1028_v59  ;;  %v694_v59 = vmul.f32 %v2645_v18, %v666_v55  ;;  %v695_v62 = vmul.f32 %v2648_v19, %v666_v55 }
 0x10c   : > { %v1040_v1 = vpop.permute.xlu0 %1039  ;;  %v1036_v14 = vcombine.low %v1032_v2, %v1033_v8 }
 0x10e   : > { %v1042_v9 = vpop.permute.xlu1 %1041  ;;  %v1038_v25 = vmax.f32 %v2583_v46, %v1036_v14  ;;  %v652_v46 = vadd.f32 %v641_v56, %v2640_v16  ;;  %v699_v14 = vadd.f32 %v691_v39, %v2621_v0 }
 0x10f   : > { %v1044_v12 = vsel %vm1043_vm5, %v1040_v1, %v1042_v9  ;;  %v1045_v13 = vsel %vm1043_vm5, %v1042_v9, %v1040_v1  ;;  %v2706_v9 = vrot.slane %v1115_v41, %v2596_v49 }
 0x110   : > { %v1052_v15 = vpop.permute.xlu0 %1051  ;;  %v1048_v20 = vcombine.low %v1044_v12, %v1045_v13  ;;  %v698_v12 = vadd.f32 %v690_v38, %v2619_v63 }
 0x112   : > { %v1054_v21 = vpop.permute.xlu1 %1053  ;;  %v1050_v27 = vmax.f32 %v1038_v25, %v1048_v20  ;;  %v2724_v20 = vadd.f32 %v695_v62, %v653_v22 }
 0x113   : > { %v1056_v23 = vsel %vm1055_vm6, %v1052_v15, %v1054_v21  ;;  %v1057_v24 = vsel %vm1055_vm6, %v1054_v21, %v1052_v15  ;;  %v654_v15 = vadd.f32 %v2683_v58, %v2655_v28 }
 0x114   : > { %v1060_v26 = vcombine.low %v1056_v23, %v1057_v24  ;;  %v1064_v32 = vpop.permute.xlu0 %1063 }
 0x116   : > { %v1066_v33 = vpop.permute.xlu1 %1065  ;;  %v1062_v36 = vmax.f32 %v1050_v27, %v1060_v26 }
 0x117   : > { %v1068_v34 = vsel %vm1067_vm7, %v1064_v32, %v1066_v33  ;;  %v1069_v35 = vsel %vm1067_vm7, %v1066_v33, %v1064_v32 }
 0x118   : > { %v1072_v37 = vcombine.low %v1068_v34, %v1069_v35 }
 0x11a   : > { %v1074_v40 = vmax.f32 %v1062_v36, %v1072_v37 }
 0x11c   : > { %v1140_v1 = vrot.slane %v1074_v40, %v2596_v49  ;;  %v1144_v2 = vrot.slane %v1074_v40, %v608_v50  ;;  %v1210_v47 = vrot.slane %v1074_v40, %v2628_v5  ;;  %v1214_v8 = vrot.slane %v1074_v40, %v678_v6 }
 0x11d   : > { %v1260_v56 = vrot.slane %v1074_v40, %v2637_v10  ;;  %v1264_v55 = vrot.slane %v1074_v40, %v728_v11  ;;  %v2717_v6 = vrot.slane %v1115_v41, %v2628_v5 }
 0x11e   : > { %v1150_v16 = vrot.slane %v1140_v1, %v2596_v49  ;;  %v1154_v17 = vrot.slane %v1144_v2, %v2596_v49  ;;  %v1220_v50 = vrot.slane %v1210_v47, %v2628_v5  ;;  %v1224_v13 = vrot.slane %v1214_v8, %v2628_v5 }
 0x11f   : > { %v2722_v49 = vadd.f32 %v694_v59, %v652_v46  ;;  %v2731_v5 = vrot.slane %v1260_v56, %v2637_v10  ;;  %v2734_v0 = vrot.slane %v1264_v55, %v2637_v10  ;;  %v655_v59 = vadd.f32 %v2683_v58, %v2657_v29 }
 0x120   : > { %v1159_v48 = vmul.f32 %v1150_v16, %v2669_v43  ;;  %v1160_v63 = vmul.f32 %v1154_v17, %v2669_v43  ;;  %v1161_v11 = vmul.f32 %v1150_v16, %v2623_v3  ;;  %v1162_v21 = vmul.f32 %v1154_v17, %v2623_v3 }
 0x121   : > { %v1157_v28 = vmul.f32 %v1150_v16, %v2603_v54  ;;  %v1158_v23 = vmul.f32 %v1154_v17, %v2603_v54  ;;  %v1229_v24 = vmul.f32 %v1220_v50, %v2679_v53  ;;  %v1230_v25 = vmul.f32 %v1224_v13, %v2679_v53 }
 0x122   : > { %v1231_v43 = vmul.f32 %v1220_v50, %v2677_v52  ;;  %v1232_v26 = vmul.f32 %v1224_v13, %v2677_v52  ;;  %v1227_v32 = vmul.f32 %v1220_v50, %v2673_v45  ;;  %v1228_v10 = vmul.f32 %v1224_v13, %v2673_v45 }
 0x123   : > { %v1185_v3 = vadd.f32 %v2667_v42, %v1157_v28  ;;  %v1186_v27 = vadd.f32 %v2667_v42, %v1158_v23  ;;  %v1187_v34 = vadd.f32 %v2671_v44, %v1159_v48  ;;  %v1188_v54 = vadd.f32 %v2671_v44, %v1160_v63 }
 0x124   : > { %v1189_v35 = vadd.f32 %v2675_v51, %v1161_v11  ;;  %v1190_v53 = vadd.f32 %v2675_v51, %v1162_v21  ;;  %v1277_v39 = vmul.f32 %v2731_v5, %v2681_v57  ;;  %v1278_v45 = vmul.f32 %v2734_v0, %v2681_v57 }
 0x125   : > { %v708_v33 = vpop.permute.xlu0 %707  ;;  %v1235_v37 = vadd.f32 %v1227_v32, %v1185_v3  ;;  %v1236_v38 = vadd.f32 %v1228_v10, %v1186_v27  ;;  %v1155_v40 = vmul.f32 %v1150_v16, %v2625_v4  ;;  %v1156_v44 = vmul.f32 %v1154_v17, %v2625_v4 }
 0x126   : > { %v740_v36 = vmul.f32 %v2660_v30, %v708_v33  ;;  %v741_v52 = vmul.f32 %v2663_v31, %v708_v33  ;;  %v1237_v62 = vadd.f32 %v1229_v24, %v1187_v34  ;;  %v1238_v1 = vadd.f32 %v1230_v25, %v1188_v54 }
 0x127   : > { %v670_v42 = vpop.permute.xlu1 %669  ;;  %v1239_v47 = vadd.f32 %v1231_v43, %v1189_v35  ;;  %v1240_v8 = vadd.f32 %v1232_v26, %v1190_v53  ;;  %v1285_v56 = vadd.f32 %v1277_v39, %v1235_v37  ;;  %v1286_v57 = vadd.f32 %v1278_v45, %v1236_v38 }
 0x128   : > { %v748_v41 = vadd.f32 %v740_v36, %v698_v12  ;;  %v749_v46 = vadd.f32 %v741_v52, %v699_v14  ;;  %v696_v51 = vmul.f32 %v2645_v18, %v670_v42  ;;  %v697_v22 = vmul.f32 %v2648_v19, %v670_v42 }
 0x129   : > { %v1251_v2 = vpop.permute.xlu0 %1250  ;;  %v1183_v16 = vadd.f32 %v2610_v60, %v1155_v40  ;;  %v1184_v18 = vadd.f32 %v2610_v60, %v1156_v44  ;;  %v1225_v29 = vmul.f32 %v1220_v50, %v2616_v61  ;;  %v1226_v58 = vmul.f32 %v1224_v13, %v2616_v61 }
 0x12a   : > { %v1279_v4 = vmul.f32 %v2731_v5, %v1251_v2  ;;  %v756_v17 = vmax.f32 %v748_v41, 0.0  ;;  %v757_v55 = vmax.f32 %v749_v46, 0.0  ;;  %v704_v12 = vadd.f32 %v696_v51, %v654_v15 }
 0x12b   : > { %v705_v19 = vadd.f32 %v697_v22, %v655_v59  ;;  %v1280_v48 = vmul.f32 %v2734_v0, %v1251_v2  ;;  %v1293_v60 = vmax.f32 %v1285_v56, 0.0  ;;  %v1233_v15 = vadd.f32 %v1225_v29, %v1183_v16  ;;  %v549_v56 = vld [vmem:[%s3102_s5] sm:$0xff]  ;;  %v551_v29 = vld [vmem:[%s3102_s5 + $0x10] sm:$0xff] }
 0x12c   : > { %v1255_v14 = vpop.permute.xlu1 %1254  ;;  %v764_v28 = vadd.f32 %v757_v55, %v756_v17  ;;  %v1287_v25 = vadd.f32 %v1279_v4, %v1237_v62  ;;  %v1294_v50 = vmax.f32 %v1286_v57, 0.0  ;;  %v1234_v26 = vadd.f32 %v1226_v58, %v1184_v18  ;;  %2068 = vmatprep.mubr.msk.f32.mxu0 %vm776_vm8, %v549_v56  ;;  %v1083_v57 = vld [vmem:[%s3106_s9] sm:$0xff] }
 0x12d   : > { %v1281_v63 = vmul.f32 %v2731_v5, %v1255_v14  ;;  %v1282_v11 = vmul.f32 %v2734_v0, %v1255_v14  ;;  %v720_v21 = vpop.permute.xlu0 %719  ;;  %v1275_v32 = vmul.f32 %v2731_v5, %v2631_v7  ;;  %v1288_v10 = vadd.f32 %v1280_v48, %v1238_v1  ;;  %2100 = vmatprep.mubr.msk.f32.mxu1 %vm776_vm8, %v1083_v57 }
 0x12e   : > { %v746_v23 = vmul.f32 %v2660_v30, %v720_v21  ;;  %v747_v24 = vmul.f32 %v2663_v31, %v720_v21  ;;  %765 = vadd.xlane.f32.xlu1 %v764_v28  ;;  %v1276_v54 = vmul.f32 %v2734_v0, %v2631_v7  ;;  %v1312_v36 = vmul.f32 %v2706_v9, %v1293_v60  ;;  %v553_v21 = vld [vmem:[%s3102_s5 + $0x20] sm:$0xff]  ;;  %v1084_v28 = vld [vmem:[%s3106_s9 + $0x8] sm:$0xff]  ;;  %v555_v60 = vld [vmem:[%s3102_s5 + $0x30] sm:$0xff] }
 0x12f   : > { %v1289_v43 = vadd.f32 %v1281_v63, %v1239_v47  ;;  %v1290_v61 = vadd.f32 %v1282_v11, %v1240_v8  ;;  %v1283_v52 = vadd.f32 %v1275_v32, %v1233_v15  ;;  %v1313_v42 = vmul.f32 %v2717_v6, %v1294_v50  ;;  %v552_v63 = vld [vmem:[%s3102_s5 + $0x18] sm:$0xff]  ;;  %v557_v50 = vld [vmem:[%s3102_s5 + $0x40] sm:$0xff] }
 0x130   : > { %v754_v13 = vadd.f32 %v746_v23, %v704_v12  ;;  %v755_v3 = vadd.f32 %v747_v24, %v705_v19  ;;  %v716_v27 = vpop.permute.xlu1 %715  ;;  %v1284_v5 = vadd.f32 %v1276_v54, %v1234_v26  ;;  %v1295_v7 = vmax.f32 %v1287_v25, 0.0  ;;  %v550_v19 = vld [vmem:[%s3102_s5 + $0x8] sm:$0xff]  ;;  %v1085_v24 = vld [vmem:[%s3106_s9 + $0x10] sm:$0xff]  ;;  %v1086_v15 = vld [vmem:[%s3106_s9 + $0x18] sm:$0xff] }
 0x131   : > { %v744_v33 = vmul.f32 %v2660_v30, %v716_v27  ;;  %v745_v34 = vmul.f32 %v2663_v31, %v716_v27  ;;  %v1297_v39 = vmax.f32 %v1289_v43, 0.0  ;;  %v1298_v45 = vmax.f32 %v1290_v61, 0.0  ;;  %v554_v23 = vld [vmem:[%s3102_s5 + $0x28] sm:$0xff]  ;;  %v556_v25 = vld [vmem:[%s3102_s5 + $0x38] sm:$0xff]  ;;  %v1087_v43 = vld [vmem:[%s3106_s9 + $0x20] sm:$0xff] }
 0x132   : > { %v762_v35 = vmax.f32 %v754_v13, 0.0  ;;  %v763_v53 = vmax.f32 %v755_v3, 0.0  ;;  %v1291_v40 = vmax.f32 %v1283_v52, 0.0  ;;  %v1292_v41 = vmax.f32 %v1284_v5, 0.0  ;;  %v1088_v26 = vld [vmem:[%s3106_s9 + $0x28] sm:$0xff]  ;;  %v1089_v13 = vld [vmem:[%s3106_s9 + $0x30] sm:$0xff] }
 0x133   : > { %v752_v37 = vadd.f32 %v744_v33, %v2722_v49  ;;  %v753_v38 = vadd.f32 %v745_v34, %v2724_v20  ;;  %v1296_v0 = vmax.f32 %v1288_v10, 0.0  ;;  %v1321_v22 = vadd.f32 %v1313_v42, %v1312_v36  ;;  %v558_v61 = vld [vmem:[%s3102_s5 + $0x48] sm:$0xff]  ;;  %v559_v3 = vld [vmem:[%s3102_s5 + $0x50] sm:$0xff]  ;;  %v1090_v27 = vld [vmem:[%s3106_s9 + $0x38] sm:$0xff] }
 0x134   : > { %v773_v30 = vadd.f32 %v763_v53, %v762_v35  ;;  %v1310_v51 = vmul.f32 %v2706_v9, %v1291_v40  ;;  %v1311_v49 = vmul.f32 %v2717_v6, %v1292_v41  ;;  %v1316_v20 = vmul.f32 %v2706_v9, %v1297_v39  ;;  %v560_v32 = vld [vmem:[%s3102_s5 + $0x58] sm:$0xff]  ;;  %v1091_v10 = vld [vmem:[%s3106_s9 + $0x40] sm:$0xff]  ;;  %v1092_v34 = vld [vmem:[%s3106_s9 + $0x48] sm:$0xff] }
 0x135   : > { %v760_v31 = vmax.f32 %v752_v37, 0.0  ;;  %v761_v44 = vmax.f32 %v753_v38, 0.0  ;;  %v1317_v59 = vmul.f32 %v2717_v6, %v1298_v45  ;;  %v1314_v1 = vmul.f32 %v2706_v9, %v1295_v7  ;;  %v561_v33 = vld [vmem:[%s3102_s5 + $0x60] sm:$0xff]  ;;  %v562_v54 = vld [vmem:[%s3102_s5 + $0x68] sm:$0xff]  ;;  %v1093_v35 = vld [vmem:[%s3106_s9 + $0x50] sm:$0xff] }
 0x136   : > { %774 = vadd.xlane.f32.xlu1 %v773_v30  ;;  %v1318_v62 = vadd.f32 %v1311_v49, %v1310_v51  ;;  %v1315_v2 = vmul.f32 %v2717_v6, %v1296_v0  ;;  %v563_v53 = vld [vmem:[%s3102_s5 + $0x70] sm:$0xff]  ;;  %v1094_v36 = vld [vmem:[%s3106_s9 + $0x58] sm:$0xff]  ;;  %v1095_v37 = vld [vmem:[%s3106_s9 + $0x60] sm:$0xff] }
 0x137   : > { %v770_v46 = vadd.f32 %v761_v44, %v760_v31  ;;  %v1327_v47 = vadd.f32 %v1317_v59, %v1316_v20  ;;  %v564_v52 = vld [vmem:[%s3102_s5 + $0x78] sm:$0xff]  ;;  %v1096_v38 = vld [vmem:[%s3106_s9 + $0x68] sm:$0xff]  ;;  %v1097_v42 = vld [vmem:[%s3106_s9 + $0x70] sm:$0xff] }
 0x138   : > { %v1324_v8 = vadd.f32 %v1315_v2, %v1314_v1  ;;  %v1098_v5 = vld [vmem:[%s3106_s9 + $0x78] sm:$0xff]  ;;  %v1531_v39 = vld [vmem:[%s3109_s12] sm:$0xff]  ;;  %v566_v30 = vld [vmem:[%s3103_s6 + $0x8] sm:$0xff] }
 0x139   : > { %771 = vadd.xlane.f32.xlu0 %v770_v46  ;;  %v1523_v45 = vld [vmem:[%s3108_s11] sm:$0xff]  ;;  %v568_v0 = vld [vmem:[%s3103_s6 + $0x18] sm:$0xff]  ;;  %v567_v46 = vld [vmem:[%s3103_s6 + $0x10] sm:$0xff] }
 0x13a   : > { %1322 = vadd.xlane.f32.xlu1 %v1321_v22  ;;  %v565_v40 = vld [vmem:[%s3103_s6] sm:$0xff]  ;;  %v1100_v59 = vld [vmem:[%s3107_s10 + $0x8] sm:$0xff] }
 0x13b   : > { %v570_v1 = vld [vmem:[%s3103_s6 + $0x28] sm:$0xff]  ;;  %v1099_v2 = vld [vmem:[%s3107_s10] sm:$0xff] }
 0x13d   : > { %1319 = vadd.xlane.f32.xlu0 %v1318_v62 }
 0x13e   : > { %1328 = vadd.xlane.f32.xlu1 %v1327_v47  ;;  %v569_v47 = vld [vmem:[%s3103_s6 + $0x20] sm:$0xff] }
 0x141   : > { %1325 = vadd.xlane.f32.xlu0 %v1324_v8 }
 0x16a   : > { %v769_v9 = vpop.xlane.xlu0 %768 }
 0x1bb   : > { %v766_v6 = vpop.xlane.xlu1 %765 }
 0x1bc   : > { %v2231_v16 = vpack.c.bf16 %v769_v9, %v766_v6 }
 0x1be   : > { %2232 = vmatprep.subr.bf16.mxu0 %v2231_v16 }
 0x1bf   : > { %2234 = vmatpush3.bf16.msra.mxu0 %v2231_v16 }
 0x1c3   : > { %v775_v4 = vpop.xlane.xlu1 %774 }
 0x1c6   : > { %v772_v17 = vpop.xlane.xlu0 %771 }
 0x1c7   : > { %v2235_v55 = vpack.c.bf16 %v775_v4, %v772_v17  ;;  %v1323_v18 = vpop.xlane.xlu1 %1322 }
 0x1c9   : > { %2236 = vmatprep.subr.bf16.mxu0 %v2235_v55 }
 0x1ca   : > { %v1320_v12 = vpop.xlane.xlu0 %1319  ;;  %2238 = vmatpush3.bf16.msra.mxu0 %v2235_v55  ;;  %v1102_v55 = vld [vmem:[%s3107_s10 + $0x18] sm:$0xff] }
 0x1cb   : > { %v2239_v14 = vpack.c.bf16 %v1323_v18, %v1320_v12  ;;  %v1329_v58 = vpop.xlane.xlu1 %1328  ;;  %v572_v12 = vld [vmem:[%s3103_s6 + $0x38] sm:$0xff] }
 0x1cd   : > { %2240 = vmatprep.subr.bf16.mxu1 %v2239_v14  ;;  %2069 = vmatmul.mubr.msk.f32.vlgmr.msra.gmra.mrb[0].mxu0 %vm776_vm8, %v550_v19  ;;  %v1101_v19 = vld [vmem:[%s3107_s10 + $0x10] sm:$0xff] }
 0x1ce   : > { %v1326_v48 = vpop.xlane.xlu0 %1325  ;;  %2242 = vmatpush3.bf16.msra.mxu1 %v2239_v14  ;;  %2071 = vmatprep.mubr.msk.f32.mxu0 %vm776_vm8, %v551_v29  ;;  %v571_v14 = vld [vmem:[%s3103_s6 + $0x30] sm:$0xff] }
 0x1cf   : > { %v2243_v11 = vpack.c.bf16 %v1329_v58, %v1326_v48 }
 0x1d1   : > { %2244 = vmatprep.subr.bf16.mxu1 %v2243_v11  ;;  %2072 = vmatmul.mubr.msk.f32.gmra.mrb[2].mxu0 %vm776_vm8, %v552_v63 }
 0x1d2   : > { %2246 = vmatpush3.bf16.msra.mxu1 %v2243_v11  ;;  %2074 = vmatprep.mubr.msk.f32.mxu0 %vm776_vm8, %v553_v21 }
 0x1d5   : > { %2101 = vmatmul.mubr.msk.f32.vlgmr.msra.gmra.mrb[0].mxu1 %vm776_vm8, %v1084_v28  ;;  %2075 = vmatmul.mubr.msk.f32.gmra.mrb[4].mxu0 %vm776_vm8, %v554_v23 }
 0x1d6   : > { %2103 = vmatprep.mubr.msk.f32.mxu1 %vm776_vm8, %v1085_v24  ;;  %2077 = vmatprep.mubr.msk.f32.mxu0 %vm776_vm8, %v555_v60  ;;  %v1104_v60 = vld [vmem:[%s3107_s10 + $0x28] sm:$0xff] }
 0x1d9   : > { %2104 = vmatmul.mubr.msk.f32.gmra.mrb[2].mxu1 %vm776_vm8, %v1086_v15  ;;  %2078 = vmatmul.mubr.msk.f32.gmra.mrb[6].mxu0 %vm776_vm8, %v556_v25  ;;  %v574_v25 = vld [vmem:[%s3103_s6 + $0x48] sm:$0xff] }
 0x1da   : > { %2106 = vmatprep.mubr.msk.f32.mxu1 %vm776_vm8, %v1087_v43  ;;  %2080 = vmatprep.mubr.msk.f32.mxu0 %vm776_vm8, %v557_v50  ;;  %v1103_v43 = vld [vmem:[%s3107_s10 + $0x20] sm:$0xff] }
 0x1db   : > { %v573_v50 = vld [vmem:[%s3103_s6 + $0x40] sm:$0xff] }
 0x1dd   : > { %2107 = vmatmul.mubr.msk.f32.gmra.mrb[4].mxu1 %vm776_vm8, %v1088_v26  ;;  %2081 = vmatmul.mubr.msk.f32.gmra.mrb[8].mxu0 %vm776_vm8, %v558_v61 }
 0x1de   : > { %2109 = vmatprep.mubr.msk.f32.mxu1 %vm776_vm8, %v1089_v13  ;;  %2083 = vmatprep.mubr.msk.f32.mxu0 %vm776_vm8, %v559_v3 }
 0x1e1   : > { %2110 = vmatmul.mubr.msk.f32.gmra.mrb[6].mxu1 %vm776_vm8, %v1090_v27  ;;  %2084 = vmatmul.mubr.msk.f32.gmra.mrb[10].mxu0 %vm776_vm8, %v560_v32 }
 0x1e2   : > { %2112 = vmatprep.mubr.msk.f32.mxu1 %vm776_vm8, %v1091_v10  ;;  %2086 = vmatprep.mubr.msk.f32.mxu0 %vm776_vm8, %v561_v33 }
 0x1e5   : > { %2113 = vmatmul.mubr.msk.f32.gmra.mrb[8].mxu1 %vm776_vm8, %v1092_v34  ;;  %2087 = vmatmul.mubr.msk.f32.gmra.mrb[12].mxu0 %vm776_vm8, %v562_v54  ;;  %v1106_v54 = vld [vmem:[%s3107_s10 + $0x38] sm:$0xff] }
 0x1e6   : > { %2115 = vmatprep.mubr.msk.f32.mxu1 %vm776_vm8, %v1093_v35  ;;  %2089 = vmatprep.mubr.msk.f32.mxu0 %vm776_vm8, %v563_v53  ;;  %v576_v53 = vld [vmem:[%s3103_s6 + $0x58] sm:$0xff] }
 0x1e9   : > { %2116 = vmatmul.mubr.msk.f32.gmra.mrb[10].mxu1 %vm776_vm8, %v1094_v36  ;;  %2090 = vmatmul.mubr.msk.f32.gmra.mrb[14].mxu0 %vm776_vm8, %v564_v52  ;;  %v1105_v36 = vld [vmem:[%s3107_s10 + $0x30] sm:$0xff] }
 0x1ea   : > { %2118 = vmatprep.mubr.msk.f32.mxu1 %vm776_vm8, %v1095_v37  ;;  %2200 = vmatprep.mubr.f32.mxu0 %v1523_v45  ;;  %v575_v52 = vld [vmem:[%s3103_s6 + $0x50] sm:$0xff] }
 0x1ed   : > { %2119 = vmatmul.mubr.msk.f32.gmra.mrb[12].mxu1 %vm776_vm8, %v1096_v38 }
 0x1ee   : > { %2121 = vmatprep.mubr.msk.f32.mxu1 %vm776_vm8, %v1097_v42 }
 0x1f1   : > { %2122 = vmatmul.mubr.msk.f32.gmra.mrb[14].mxu1 %vm776_vm8, %v1098_v5 }
 0x1f2   : > { %2156 = vmatprep.mubr.f32.mxu1 %v1531_v39 }
 0x2a0   : > { %v2070_v31 = vpop.f32.mrb[0].mxu0 }
 0x2a1   : > { %v897_v44 = vadd.f32 %v2070_v31, %v566_v30  ;;  %v891_v41 = vpop.f32.mrb[1].mxu0 }
 0x2a2   : > { %v892_v7 = vadd.f32 %v891_v41, %v565_v40 }
 0x2a4   : > { %v2247_v51 = vpack.c.bf16 %v897_v44, %v892_v7  ;;  %v2073_v49 = vpop.f32.mrb[2].mxu0  ;;  %v1108_v44 = vld [vmem:[%s3107_s10 + $0x48] sm:$0xff] }
 0x2a5   : > { %v907_v22 = vadd.f32 %v2073_v49, %v568_v0  ;;  %v901_v20 = vpop.f32.mrb[3].mxu0  ;;  %v578_v7 = vld [vmem:[%s3103_s6 + $0x68] sm:$0xff]  ;;  %v1107_v0 = vld [vmem:[%s3107_s10 + $0x40] sm:$0xff] }
 0x2a6   : > { %v902_v62 = vadd.f32 %v901_v20, %v567_v46  ;;  %2248 = vmatprep.subr.bf16.mxu1 %v2247_v51  ;;  %v577_v46 = vld [vmem:[%s3103_s6 + $0x60] sm:$0xff] }
 0x2a7   : > { %2250 = vmatpush3.bf16.msra.mxu1 %v2247_v51 }
 0x2a8   : > { %v2102_v8 = vpop.f32.mrb[0].mxu1  ;;  %v2251_v56 = vpack.c.bf16 %v907_v22, %v902_v62  ;;  %v2076_v57 = vpop.f32.mrb[4].mxu0 }
 0x2a9   : > { %v1450_v9 = vadd.f32 %v2102_v8, %v1100_v59  ;;  %v1444_v6 = vpop.f32.mrb[1].mxu1  ;;  %v917_v16 = vadd.f32 %v2076_v57, %v570_v1  ;;  %v911_v4 = vpop.f32.mrb[5].mxu0  ;;  %v1110_v8 = vld [vmem:[%s3107_s10 + $0x58] sm:$0xff] }
 0x2aa   : > { %v1445_v17 = vadd.f32 %v1444_v6, %v1099_v2  ;;  %v912_v18 = vadd.f32 %v911_v4, %v569_v47  ;;  %2252 = vmatprep.subr.bf16.mxu1 %v2251_v56  ;;  %v580_v57 = vld [vmem:[%s3103_s6 + $0x78] sm:$0xff]  ;;  %v579_v6 = vld [vmem:[%s3103_s6 + $0x70] sm:$0xff] }
 0x2ab   : > { %2254 = vmatpush3.bf16.msra.mxu1 %v2251_v56 }
 0x2ac   : > { %v2279_v29 = vpack.c.bf16 %v1450_v9, %v1445_v17  ;;  %v2105_v58 = vpop.f32.mrb[2].mxu1  ;;  %v2255_v48 = vpack.c.bf16 %v917_v16, %v912_v18  ;;  %v2079_v63 = vpop.f32.mrb[6].mxu0  ;;  %v1109_v9 = vld [vmem:[%s3107_s10 + $0x50] sm:$0xff] }
 0x2ad   : > { %v1460_v11 = vadd.f32 %v2105_v58, %v1102_v55  ;;  %v1454_v21 = vpop.f32.mrb[3].mxu1  ;;  %v927_v28 = vadd.f32 %v2079_v63, %v572_v12  ;;  %v921_v23 = vpop.f32.mrb[7].mxu0  ;;  %v1112_v58 = vld [vmem:[%s3107_s10 + $0x68] sm:$0xff]  ;;  %v1111_v63 = vld [vmem:[%s3107_s10 + $0x60] sm:$0xff] }
 0x2ae   : > { %v1455_v24 = vadd.f32 %v1454_v21, %v1101_v19  ;;  %2280 = vmatprep.subr.bf16.mxu0 %v2279_v29  ;;  %v922_v15 = vadd.f32 %v921_v23, %v571_v14  ;;  %2256 = vmatprep.subr.bf16.mxu1 %v2255_v48 }
 0x2af   : > { %2282 = vmatpush3.bf16.msra.mxu0 %v2279_v29  ;;  %2258 = vmatpush3.bf16.msra.mxu1 %v2255_v48 }
 0x2b0   : > { %v2283_v26 = vpack.c.bf16 %v1460_v11, %v1455_v24  ;;  %v2108_v61 = vpop.f32.mrb[4].mxu1  ;;  %v2259_v13 = vpack.c.bf16 %v927_v28, %v922_v15  ;;  %v2082_v3 = vpop.f32.mrb[8].mxu0  ;;  %v1114_v15 = vld [vmem:[%s3107_s10 + $0x78] sm:$0xff] }
 0x2b1   : > { %v1470_v27 = vadd.f32 %v2108_v61, %v1104_v60  ;;  %v1464_v32 = vpop.f32.mrb[5].mxu1  ;;  %v937_v10 = vadd.f32 %v2082_v3, %v574_v25  ;;  %v931_v33 = vpop.f32.mrb[9].mxu0  ;;  %v1113_v25 = vld [vmem:[%s3107_s10 + $0x70] sm:$0xff] }
 0x2b2   : > { %v1465_v34 = vadd.f32 %v1464_v32, %v1103_v43  ;;  %2284 = vmatprep.subr.bf16.mxu0 %v2283_v26  ;;  %v932_v35 = vadd.f32 %v931_v33, %v573_v50  ;;  %2260 = vmatprep.subr.bf16.mxu1 %v2259_v13  ;;  %v1532_v43 = vld [vmem:[%s3109_s12 + $0x8] sm:$0xff]  ;;  %v1533_v61 = vld [vmem:[%s3109_s12 + $0x10] sm:$0xff]  ;;  %v1534_v32 = vld [vmem:[%s3109_s12 + $0x18] sm:$0xff] }
 0x2b3   : > { %2286 = vmatpush3.bf16.msra.mxu0 %v2283_v26  ;;  %2262 = vmatpush3.bf16.msra.mxu1 %v2259_v13  ;;  %v1535_v33 = vld [vmem:[%s3109_s12 + $0x20] sm:$0xff] }
 0x2b4   : > { %v2287_v37 = vpack.c.bf16 %v1470_v27, %v1465_v34  ;;  %v2111_v38 = vpop.f32.mrb[6].mxu1  ;;  %v2263_v42 = vpack.c.bf16 %v937_v10, %v932_v35  ;;  %v2085_v5 = vpop.f32.mrb[10].mxu0  ;;  %v1524_v34 = vld [vmem:[%s3108_s11 + $0x8] sm:$0xff]  ;;  %v1525_v35 = vld [vmem:[%s3108_s11 + $0x10] sm:$0xff] }
 0x2b5   : > { %v1480_v39 = vadd.f32 %v2111_v38, %v1106_v54  ;;  %v1474_v45 = vpop.f32.mrb[7].mxu1  ;;  %v947_v30 = vadd.f32 %v2085_v5, %v576_v53  ;;  %v941_v40 = vpop.f32.mrb[11].mxu0  ;;  %v1536_v54 = vld [vmem:[%s3109_s12 + $0x28] sm:$0xff]  ;;  %v1537_v53 = vld [vmem:[%s3109_s12 + $0x30] sm:$0xff]  ;;  %v1530_v5 = vld [vmem:[%s3108_s11 + $0x38] sm:$0xff] }
 0x2b6   : > { %v1475_v31 = vadd.f32 %v1474_v45, %v1105_v36  ;;  %2288 = vmatprep.subr.bf16.mxu0 %v2287_v37  ;;  %v942_v41 = vadd.f32 %v941_v40, %v575_v52  ;;  %2264 = vmatprep.subr.bf16.mxu1 %v2263_v42  ;;  %v1526_v36 = vld [vmem:[%s3108_s11 + $0x18] sm:$0xff]  ;;  %v1528_v38 = vld [vmem:[%s3108_s11 + $0x28] sm:$0xff]  ;;  %v2391_v45 = vmov 0.0  }
 0x2b7   : > { %2290 = vmatpush3.bf16.msra.mxu0 %v2287_v37  ;;  %2266 = vmatpush3.bf16.msra.mxu1 %v2263_v42  ;;  %v1538_v52 = vld [vmem:[%s3109_s12 + $0x38] sm:$0xff]  ;;  %v1527_v37 = vld [vmem:[%s3108_s11 + $0x20] sm:$0xff]  ;;  %v1529_v42 = vld [vmem:[%s3108_s11 + $0x30] sm:$0xff] }
 0x2b8   : > { %v2291_v51 = vpack.c.bf16 %v1480_v39, %v1475_v31  ;;  %v2114_v49 = vpop.f32.mrb[8].mxu1  ;;  %v2267_v22 = vpack.c.bf16 %v947_v30, %v942_v41  ;;  %v2088_v20 = vpop.f32.mrb[12].mxu0  ;;  %v2389_v39 = vmov 0.0|0.0  }
 0x2b9   : > { %v1490_v59 = vadd.f32 %v2114_v49, %v1108_v44  ;;  %v1484_v62 = vpop.f32.mrb[9].mxu1  ;;  %v957_v1 = vadd.f32 %v2088_v20, %v578_v7  ;;  %v951_v2 = vpop.f32.mrb[13].mxu0  ;;  %v1750_v7 = vld [vmem:[%s3110_s13 + $0x8] sm:$0xff]  ;;  %v1749_v49 = vld [vmem:[%s3110_s13] sm:$0xff] }
 0x2ba   : > { %v1485_v47 = vadd.f32 %v1484_v62, %v1107_v0  ;;  %2292 = vmatprep.subr.bf16.mxu0 %v2291_v51  ;;  %v952_v56 = vadd.f32 %v951_v2, %v577_v46  ;;  %2268 = vmatprep.subr.bf16.mxu1 %v2267_v22  ;;  %v1752_v2 = vld [vmem:[%s3110_s13 + $0x18] sm:$0xff] }
 0x2bb   : > { %2294 = vmatpush3.bf16.msra.mxu0 %v2291_v51  ;;  %2270 = vmatpush3.bf16.msra.mxu1 %v2267_v22 }
 0x2bc   : > { %v2295_v16 = vpack.c.bf16 %v1490_v59, %v1485_v47  ;;  %v2117_v4 = vpop.f32.mrb[10].mxu1  ;;  %v2271_v17 = vpack.c.bf16 %v957_v1, %v952_v56  ;;  %v2091_v55 = vpop.f32.mrb[14].mxu0 }
 0x2bd   : > { %v1500_v18 = vadd.f32 %v2117_v4, %v1110_v8  ;;  %v1494_v12 = vpop.f32.mrb[11].mxu1  ;;  %v967_v19 = vadd.f32 %v2091_v55, %v580_v57  ;;  %v961_v14 = vpop.f32.mrb[15].mxu0 }
 0x2be   : > { %v1495_v29 = vadd.f32 %v1494_v12, %v1109_v9  ;;  %2296 = vmatprep.subr.bf16.mxu0 %v2295_v16  ;;  %v962_v48 = vadd.f32 %v961_v14, %v579_v6  ;;  %2272 = vmatprep.subr.bf16.mxu1 %v2271_v17  ;;  %v1751_v9 = vld [vmem:[%s3110_s13 + $0x10] sm:$0xff] }
 0x2bf   : > { %2298 = vmatpush3.bf16.msra.mxu0 %v2295_v16  ;;  %2274 = vmatpush3.bf16.msra.mxu1 %v2271_v17 }
 0x2c0   : > { %v2299_v11 = vpack.c.bf16 %v1500_v18, %v1495_v29  ;;  %v2120_v21 = vpop.f32.mrb[12].mxu1  ;;  %v2275_v28 = vpack.c.bf16 %v967_v19, %v962_v48  ;;  %v1754_v19 = vld [vmem:[%s3110_s13 + $0x28] sm:$0xff]  ;;  %v1753_v48 = vld [vmem:[%s3110_s13 + $0x20] sm:$0xff] }
 0x2c1   : > { %v1510_v23 = vadd.f32 %v2120_v21, %v1112_v58  ;;  %v1504_v24 = vpop.f32.mrb[13].mxu1 }
 0x2c2   : > { %v1505_v60 = vadd.f32 %v1504_v24, %v1111_v63  ;;  %2300 = vmatprep.subr.bf16.mxu0 %v2299_v11  ;;  %2276 = vmatprep.subr.bf16.mxu1 %v2275_v28 }
 0x2c3   : > { %2302 = vmatpush3.bf16.msra.mxu0 %v2299_v11  ;;  %2278 = vmatpush3.bf16.msra.mxu1 %v2275_v28 }
 0x2c4   : > { %v2303_v50 = vpack.c.bf16 %v1510_v23, %v1505_v60  ;;  %v2123_v26 = vpop.f32.mrb[14].mxu1  ;;  %2311 = vmatprep.subr.bf16.mxu1 %v2389_v39  ;;  %v1756_v60 = vld [vmem:[%s3110_s13 + $0x38] sm:$0xff] }
 0x2c5   : > { %v1520_v13 = vadd.f32 %v2123_v26, %v1114_v15  ;;  %v1514_v3 = vpop.f32.mrb[15].mxu1 }
 0x2c6   : > { %v1515_v27 = vadd.f32 %v1514_v3, %v1113_v25  ;;  %2304 = vmatprep.subr.bf16.mxu0 %v2303_v50  ;;  %2157 = vmatmul.mubr.f32.vlgmr.msra.gmra.mrb[16].mxu1 %v1532_v43 }
 0x2c7   : > { %2306 = vmatpush3.bf16.msra.mxu0 %v2303_v50  ;;  %2159 = vmatprep.mubr.f32.mxu1 %v1533_v61  ;;  %v1755_v50 = vld [vmem:[%s3110_s13 + $0x30] sm:$0xff] }
 0x2c8   : > { %v2307_v10 = vpack.c.bf16 %v1520_v13, %v1515_v27 }
 0x2ca   : > { %2308 = vmatprep.subr.bf16.mxu0 %v2307_v10  ;;  %2160 = vmatmul.mubr.f32.gmra.mrb[18].mxu1 %v1534_v32 }
 0x2cb   : > { %2310 = vmatpush3.bf16.msra.mxu0 %v2307_v10  ;;  %2162 = vmatprep.mubr.f32.mxu1 %v1535_v33 }
 0x2ce   : > { %2201 = vmatmul.mubr.f32.vlgmr.msra.gmra.mrb[16].mxu0 %v1524_v34  ;;  %2163 = vmatmul.mubr.f32.gmra.mrb[20].mxu1 %v1536_v54  ;;  %v1773_v34 = vld [vmem:[%s3111_s14] sm:$0x7f] }
 0x2cf   : > { %2203 = vmatprep.mubr.f32.mxu0 %v1525_v35  ;;  %2165 = vmatprep.mubr.f32.mxu1 %v1537_v53  ;;  %v1774_v54 = vld [vmem:[%s3112_s15] sm:$0x7f] }
 0x2d2   : > { %2204 = vmatmul.mubr.f32.gmra.mrb[18].mxu0 %v1526_v36  ;;  %2166 = vmatmul.mubr.f32.gmra.mrb[22].mxu1 %v1538_v52 }
 0x2d3   : > { %2206 = vmatprep.mubr.f32.mxu0 %v1527_v37  ;;  %2228 = vmatprep.mubr.msk.f32.mxu1 %vm2390_vm9, %v2391_v45 }
 0x2d6   : > { %2207 = vmatmul.mubr.f32.gmra.mrb[20].mxu0 %v1528_v38 }
 0x2d7   : > { %2209 = vmatprep.mubr.f32.mxu0 %v1529_v42 }
 0x2da   : > { %2210 = vmatmul.mubr.f32.gmra.mrb[22].mxu0 %v1530_v5 }
 0x399   : > { %v2158_v30 = vpop.f32.mrb[16].mxu1 }
 0x39a   : > { %v1605_v40 = vpop.f32.mrb[17].mxu1 }
 0x39d   : > { %v2161_v31 = vpop.f32.mrb[18].mxu1 }
 0x39e   : > { %v1615_v44 = vpop.f32.mrb[19].mxu1 }
 0x3a1   : > { %v2202_v41 = vpop.f32.mrb[16].mxu0  ;;  %v2164_v0 = vpop.f32.mrb[20].mxu1 }
 0x3a2   : > { %v1716_v46 = vadd.f32 %v2202_v41, %v2158_v30  ;;  %v1710_v51 = vpop.f32.mrb[17].mxu0  ;;  %v1625_v22 = vpop.f32.mrb[21].mxu1 }
 0x3a3   : > { %v1711_v20 = vadd.f32 %v1710_v51, %v1605_v40 }
 0x3a4   : > { %v1758_v59 = vadd.f32 %v1750_v7, %v1716_v46 }
 0x3a5   : > { %v1757_v62 = vadd.f32 %v1749_v49, %v1711_v20  ;;  %v2205_v1 = vpop.f32.mrb[18].mxu0  ;;  %v2167_v47 = vpop.f32.mrb[22].mxu1 }
 0x3a6   : > { %v1766_v8 = vmax.f32 %v1758_v59, 0.0  ;;  %v1726_v56 = vadd.f32 %v2205_v1, %v2161_v31  ;;  %v1720_v57 = vpop.f32.mrb[19].mxu0  ;;  %v1635_v6 = vpop.f32.mrb[23].mxu1 }
 0x3a7   : > { %v1765_v16 = vmax.f32 %v1757_v62, 0.0  ;;  %v1721_v4 = vadd.f32 %v1720_v57, %v1615_v44 }
 0x3a8   : > { %v1760_v17 = vadd.f32 %v1752_v2, %v1726_v56 }
 0x3a9   : > { %v2312_v55 = vpack.c.bf16 %v1766_v8, %v1765_v16  ;;  %v1759_v18 = vadd.f32 %v1751_v9, %v1721_v4  ;;  %v2208_v12 = vpop.f32.mrb[20].mxu0 }
 0x3aa   : > { %v1768_v14 = vmax.f32 %v1760_v17, 0.0  ;;  %v1736_v29 = vadd.f32 %v2208_v12, %v2164_v0  ;;  %v1730_v58 = vpop.f32.mrb[21].mxu0 }
 0x3ab   : > { %v1767_v63 = vmax.f32 %v1759_v18, 0.0  ;;  %v1731_v11 = vadd.f32 %v1730_v58, %v1625_v22  ;;  %2313 = vmatpush3.bf16.msra.mxu1 %v2312_v55 }
 0x3ac   : > { %v1762_v21 = vadd.f32 %v1754_v19, %v1736_v29  ;;  %2314 = vmatprep.subr.bf16.mxu1 %v2389_v39 }
 0x3ad   : > { %v2315_v28 = vpack.c.bf16 %v1768_v14, %v1767_v63  ;;  %v1761_v23 = vadd.f32 %v1753_v48, %v1731_v11  ;;  %v2211_v24 = vpop.f32.mrb[22].mxu0 }
 0x3ae   : > { %v1770_v15 = vmax.f32 %v1762_v21, 0.0  ;;  %v1746_v25 = vadd.f32 %v2211_v24, %v2167_v47  ;;  %v1740_v43 = vpop.f32.mrb[23].mxu0 }
 0x3af   : > { %v1769_v26 = vmax.f32 %v1761_v23, 0.0  ;;  %v1741_v61 = vadd.f32 %v1740_v43, %v1635_v6  ;;  %2316 = vmatpush3.bf16.msra.mxu1 %v2315_v28 }
 0x3b0   : > { %v1764_v13 = vadd.f32 %v1756_v60, %v1746_v25  ;;  %2317 = vmatprep.subr.bf16.mxu1 %v2389_v39 }
 0x3b1   : > { %v2318_v3 = vpack.c.bf16 %v1770_v15, %v1769_v26  ;;  %v1763_v27 = vadd.f32 %v1755_v50, %v1741_v61 }
 0x3b2   : > { %v1772_v32 = vmax.f32 %v1764_v13, 0.0 }
 0x3b3   : > { %v1771_v10 = vmax.f32 %v1763_v27, 0.0  ;;  %2319 = vmatpush3.bf16.msra.mxu1 %v2318_v3 }
 0x3b4   : > { %2320 = vmatprep.subr.bf16.mxu1 %v2389_v39 }
 0x3b5   : > { %v2321_v33 = vpack.c.bf16 %v1772_v32, %v1771_v10 }
 0x3b7   : > { %2322 = vmatpush3.bf16.msra.mxu1 %v2321_v33 }
 0x3ba   : > { %2229 = vmatmul.mubr.msk.f32.vlgmr.msra.gmra.mrb[24].mxu1 %vm1775_vm10, %v1773_v34 }
 0x48d   : > { %v1845_v35 = vpop.f32.mrb[24].mxu1 }
 0x48e   : > { %v1846_v53 = vadd.f32 %v1845_v35, %v1774_v54  ;;  %v2230_v36 = vpop.f32.mrb[25].mxu1 }
 0x490   : > { %1850 = vst.msk [vmem:[%s539_s19] sm:$0x7f] %vm1849_vm11, %v1846_v53 }
 0x491 PF: > { %s26_s21 = sadd.s32 1, %s2376_s21  }
 0x492   : > { %p23_p4 = scmp.ge.s32.totalorder %s26_s21, 4  }
 0x494   :  { %25 = sbr.rel (!%p23_p4) target bundleno = 2 (0x2), region = 117 }

</bundles_post_ra>
